<compile_context>
chip_gen: v6e
topology: v6e:2x2x1
jax: 0.10.0
libtpu: 0.0.40
codegen_flags: <defaults>
</compile_context>

<pallas_src>
import functools

import jax
import jax.numpy as jnp
from jax.experimental import pallas as pl
from jax.experimental.pallas import tpu as pltpu

EPS = 1e-5
REF_PRECISION = jax.lax.Precision.HIGHEST   # only used by the pure-JAX reference


def _col_of(flat, W):
    """Column index of a flat spatial position (input may be negative)."""
    if W & (W - 1) == 0:
        # two's-complement AND gives the correct non-negative mod for pow2 W
        return jax.lax.bitwise_and(flat, W - 1)
    # TODO(synk): non-power-of-two W falls back to vector floor-mod (slow VPU path).
    return flat % W


def _cat(parts, axis):
    return parts[0] if len(parts) == 1 else jnp.concatenate(parts, axis=axis)


def _inception_kernel(x_ref,
                      w13_ref, sc13_ref, sh13_ref,
                      w2a_ref, sc2a_ref, sh2a_ref,
                      w2b_ref, sc2b_ref, sh2b_ref,
                      o_ref, *, N, H, W, Cout, Cinp):
    HW = H * W
    A = 4 * W + 4               # flat offset of image pixel (0,0) inside the padded row
    Q = HW + 4 * W + 4          # zero-bordered extended domain width (3x3 output)
    WD3 = 2 * W + Q             # width of kw-hoisted source copies for the 3x3 taps
    WD5 = 4 * W + HW            # width of kw-hoisted copies for the 5x5 taps
    WDP = 2 * W + HW            # width of kw-hoisted copies for the 3x3 max-pool
    bf16 = jnp.bfloat16
    f32 = jnp.float32

    # ---- masks (computed once, shared across images and kh) -----------------
    u3 = jax.lax.broadcasted_iota(jnp.int32, (1, WD3), 1)
    c3 = _col_of(u3 - (2 * W + 2), W)
    m3 = {0: c3 >= 1, 2: c3 <= W - 2}                               # kw=1 always valid

    q = jax.lax.broadcasted_iota(jnp.int32, (1, Q), 1)
    qp = q - (2 * W + 2)
    inner_f = ((qp >= 0) & (qp < HW)).astype(f32)                   # extended-domain interior

    u5 = jax.lax.broadcasted_iota(jnp.int32, (1, WD5), 1)
    c5 = _col_of(u5, W)
    m5 = {0: c5 >= 2, 1: c5 >= 1, 3: c5 <= W - 2, 4: c5 <= W - 3}   # kw=2 always valid

    up = jax.lax.broadcasted_iota(jnp.int32, (1, WDP), 1)
    cp = _col_of(up, W)
    mp = {0: cp >= 1, 2: cp <= W - 2}                               # kw=1 always valid

    p = jax.lax.broadcasted_iota(jnp.int32, (1, HW), 1)
    row_ok = {0: p >= W, 2: p < HW - W}                             # kh=1 always valid

    # ---- per-image tap preparation (static unroll over the tiny batch) ------
    xc_parts, g3, pool_out = [], [], []
    for n in range(N):
        xn = x_ref[n]                                               # (Cinp, L) f32

        # 1x1 branches: un-padded image slice
        xc_parts.append(xn[:, A:A + HW])

        # 3x3 conv taps: column masks hoisted per kw (2 selects instead of 9)
        g = {}
        for kw in range(3):
            src = xn[:, W + kw + 1:W + kw + 1 + WD3]
            g[kw] = src if kw == 1 else jnp.where(m3[kw], src, 0.0)
        g3.append(g)

        # branch4: 3x3 max-pool, stride 1, pad 1 (-inf border), exact f32.
        # (computed over all Cinp rows; padded rows are discarded by the wrapper)
        pc = {}
        for kw in range(3):
            src = xn[:, A - W - 1 + kw:A - W - 1 + kw + WDP]
            pc[kw] = src if kw == 1 else jnp.where(mp[kw], src, -jnp.inf)
        rmax = []
        for kh in range(3):
            s = kh * W
            v = jnp.maximum(jnp.maximum(pc[0][:, s:s + HW], pc[1][:, s:s + HW]),
                            pc[2][:, s:s + HW])
            if kh in row_ok:
                v = jnp.where(row_ok[kh], v, -jnp.inf)
            rmax.append(v)
        pool_out.append(jnp.maximum(jnp.maximum(rmax[0], rmax[1]), rmax[2]))

    # ---- branch1 + branch3 fused: one 1x1 matmul (2*Cout, Cinp)@(Cinp, N*HW) -
    xc = _cat(xc_parts, axis=1).astype(bf16)
    z13 = jnp.dot(w13_ref[...], xc, preferred_element_type=f32)
    z13 = jnp.maximum(z13 * sc13_ref[...] + sh13_ref[...], 0.0)
    z1 = z13[0:Cout, :]
    z3 = z13[Cout:2 * Cout, :]

    # ---- branch2: 3x3 conv -> BN -> ReLU over the extended domain -----------
    pats = []
    for kh in range(3):
        for kw in range(3):
            s = kh * W
            pats.append(_cat([g3[n][kw][:, s:s + Q] for n in range(N)], axis=1))
    xp3 = _cat(pats, axis=0).astype(bf16)                           # (9*Cinp, N*Q)
    t2 = jnp.dot(w2a_ref[...], xp3, preferred_element_type=f32)     # (Cout, N*Q)
    t2 = jnp.maximum(t2 * sc2a_ref[...] + sh2a_ref[...], 0.0)
    t2 = t2 * _cat([inner_f] * N, axis=1)                           # zero the border

    # ---- branch2: 5x5 conv -> BN -> ReLU -------------------------------------
    h5 = []
    for n in range(N):
        hn = {}
        for kw in range(5):
            src = t2[:, n * Q + kw:n * Q + kw + WD5]
            hn[kw] = src if kw == 2 else jnp.where(m5[kw], src, 0.0)
        h5.append(hn)
    pats = []
    for kh in range(5):
        for kw in range(5):
            s = kh * W
            pats.append(_cat([h5[n][kw][:, s:s + HW] for n in range(N)], axis=1))
    xp5 = _cat(pats, axis=0).astype(bf16)                           # (25*Cout, N*HW)
    z2 = jnp.dot(w2b_ref[...], xp5, preferred_element_type=f32)
    z2 = jnp.maximum(z2 * sc2b_ref[...] + sh2b_ref[...], 0.0)

    # ---- store: torch.cat order [branch1, branch2, branch3, branch4] --------
    # all stores are 8-aligned full-sublane / 128-aligned full-lane stores.
    for n in range(N):
        lo, hi = n * HW, (n + 1) * HW
        o_ref[n, 0:Cout, :] = z1[:, lo:hi]
        o_ref[n, Cout:2 * Cout, :] = z2[:, lo:hi]
        o_ref[n, 2 * Cout:3 * Cout, :] = z3[:, lo:hi]
        o_ref[n, 3 * Cout:3 * Cout + Cinp, :] = pool_out[n]   # rows >= Cin sliced off later


def inception_block(x_nchw, params):
    """x_nchw: (N, Cin, H, W) float32 -> (N, 3*Cout + Cin, H, W) float32."""
    N, Cin, H, W = x_nchw.shape
    Cout = params['w1'].shape[-1]
    assert Cout % 8 == 0, "layout assumes Cout is a multiple of the sublane tile (8)"
    HW = H * W
    A = 4 * W + 4
    Cinp = ((Cin + 7) // 8) * 8          # pad input channels to the sublane tile
    Ctot = 3 * Cout + Cin
    Cpad = 3 * Cout + Cinp               # 8-aligned output channel count
    L = HW + 2 * A
    # every in-kernel tap read stays inside the per-image zero halo of width A:
    assert A - W - 1 >= 0 and HW + 7 * W + 7 <= L

    # Flatten spatial, pad channels to Cinp, add a flat zero halo of width A.
    x = x_nchw.astype(jnp.float32).reshape(N, Cin, HW)
    xf = jnp.pad(x, ((0, 0), (0, Cinp - Cin), (A, A)))        # (N, Cinp, L)

    # Fold conv bias + BatchNorm (inference form) into per-channel scale/shift.
    def fold(bias, bn):
        gamma, beta, mean, var = bn
        s = gamma / jnp.sqrt(var + EPS)
        t = beta + (bias - mean) * s
        return s.reshape(-1, 1), t.reshape(-1, 1)

    s1, t1 = fold(params['b1'], params['bn1'])
    s2a, t2a = fold(params['b2a'], params['bn2a'])
    s2b, t2b = fold(params['b2b'], params['bn2b'])
    s3, t3 = fold(params['b3'], params['bn3'])

    pad_c = ((0, 0), (0, Cinp - Cin))
    w1r = jnp.pad(params['w1'].T, pad_c)                      # (Cout, Cinp)
    w3r = jnp.pad(params['w3'].T, pad_c)                      # (Cout, Cinp)
    w13 = jnp.concatenate([w1r, w3r], axis=0).astype(jnp.bfloat16)   # fused 1x1 weights
    sc13 = jnp.concatenate([s1, s3], axis=0)
    sh13 = jnp.concatenate([t1, t3], axis=0)

    w2ar = jnp.pad(params['w2a'], ((0, 0), (0, 0), (0, Cinp - Cin), (0, 0)))
    w2ar = jnp.transpose(w2ar, (3, 0, 1, 2)).reshape(Cout, 9 * Cinp).astype(jnp.bfloat16)
    w2br = jnp.transpose(params['w2b'], (3, 0, 1, 2)).reshape(Cout, 25 * Cout).astype(jnp.bfloat16)

    def full(shape):
        return pl.BlockSpec(shape, lambda i: (0,) * len(shape))

    kernel = functools.partial(_inception_kernel,
                               N=N, H=H, W=W, Cout=Cout, Cinp=Cinp)

    out = pl.pallas_call(
        kernel,
        out_shape=jax.ShapeDtypeStruct((N, Cpad, HW), jnp.float32),
        grid_spec=pltpu.PrefetchScalarGridSpec(
            num_scalar_prefetch=0,
            grid=(1,),                      # batch folded into lanes: one grid step
            in_specs=[
                full((N, Cinp, L)),
                full((2 * Cout, Cinp)), full((2 * Cout, 1)), full((2 * Cout, 1)),
                full((Cout, 9 * Cinp)), full((Cout, 1)), full((Cout, 1)),
                full((Cout, 25 * Cout)), full((Cout, 1)), full((Cout, 1)),
            ],
            out_specs=full((N, Cpad, HW)),
        ),
        compiler_params=pltpu.CompilerParams(
            dimension_semantics=("arbitrary",)),
    )(xf, w13, sc13, sh13, w2ar, s2a, t2a, w2br, s2b, t2b)

    # (N, C, H*W) is already NCHW-flat: cheap channel slice + free reshape.
    return out[:, :Ctot, :].reshape(N, Ctot, H, W)


# ----------------------------- pure-JAX reference ---------------------------
def ref_inception(x_nchw, params):
    x = jnp.transpose(x_nchw, (0, 2, 3, 1)).astype(jnp.float32)

    def conv(inp, w_hwio, bias, pad):
        y = jax.lax.conv_general_dilated(
            inp, w_hwio, (1, 1), [(pad, pad), (pad, pad)],
            dimension_numbers=('NHWC', 'HWIO', 'NHWC'), precision=REF_PRECISION)
        return y + bias

    def bn_relu(z, bn):
        gamma, beta, mean, var = bn
        return jnp.maximum((z - mean) / jnp.sqrt(var + EPS) * gamma + beta, 0.0)

    Cin = x.shape[-1]
    Cout = params['w1'].shape[-1]
    w1 = params['w1'].reshape(1, 1, Cin, Cout)
    w3 = params['w3'].reshape(1, 1, Cin, Cout)

    br1 = bn_relu(conv(x, w1, params['b1'], 0), params['bn1'])
    t = bn_relu(conv(x, params['w2a'], params['b2a'], 1), params['bn2a'])
    br2 = bn_relu(conv(t, params['w2b'], params['b2b'], 2), params['bn2b'])
    br3 = bn_relu(conv(x, w3, params['b3'], 0), params['bn3'])
    br4 = jax.lax.reduce_window(x, -jnp.inf, jax.lax.max,
                                (1, 3, 3, 1), (1, 1, 1, 1),
                                [(0, 0), (1, 1), (1, 1), (0, 0)])
    y = jnp.concatenate([br1, br2, br3, br4], axis=-1)
    return jnp.transpose(y, (0, 3, 1, 2))


def make_params(key, Cin, Cout):
    ks = jax.random.split(key, 16)

    def bn(k):
        k1, k2, k3, k4 = jax.random.split(k, 4)
        gamma = jax.random.uniform(k1, (Cout,), jnp.float32, 0.5, 1.5)
        beta = jax.random.normal(k2, (Cout,), jnp.float32) * 0.1
        mean = jax.random.normal(k3, (Cout,), jnp.float32) * 0.1
        var = jax.random.uniform(k4, (Cout,), jnp.float32, 0.5, 1.5)
        return (gamma, beta, mean, var)

    # TODO(synk): BatchNorm is implemented in inference mode with synthetic
    # running stats; PyTorch default train-mode batch statistics are not used.
    return {
        'w1': jax.random.normal(ks[0], (Cin, Cout), jnp.float32) * 0.2,
        'b1': jax.random.normal(ks[1], (Cout,), jnp.float32) * 0.1,
        'bn1': bn(ks[2]),
        'w2a': jax.random.normal(ks[3], (3, 3, Cin, Cout), jnp.float32) * 0.2,
        'b2a': jax.random.normal(ks[4], (Cout,), jnp.float32) * 0.1,
        'bn2a': bn(ks[5]),
        'w2b': jax.random.normal(ks[6], (5, 5, Cout, Cout), jnp.float32) * 0.1,
        'b2b': jax.random.normal(ks[7], (Cout,), jnp.float32) * 0.1,
        'bn2b': bn(ks[8]),
        'w3': jax.random.normal(ks[9], (Cin, Cout), jnp.float32) * 0.2,
        'b3': jax.random.normal(ks[10], (Cout,), jnp.float32) * 0.1,
        'bn3': bn(ks[11]),
    }


if __name__ == "__main__":
    key = jax.random.PRNGKey(0)
    k_x, k_p = jax.random.split(key)

    N, Cin, H, W = 2, 4, 16, 16
    Cout = 8
    x = jax.random.normal(k_x, (N, Cin, H, W), jnp.float32)
    params = make_params(k_p, Cin, Cout)

    out = inception_block(x, params)
    out = jax.block_until_ready(out)

    expected_shape = (N, 3 * Cout + Cin, H, W)
    assert out.shape == expected_shape, (out.shape, expected_shape)

    ref = jax.block_until_ready(ref_inception(x, params))
    # The kernel feeds the MXU bf16 operands (f32 accumulation), and the error
    # compounds through the 3x3 -> 5x5 chain; the reference runs at HIGHEST
    # precision, hence the relaxed tolerance.
    max_err = float(jnp.max(jnp.abs(out - ref)))
    assert jnp.allclose(out, ref, atol=1e-1, rtol=2e-2), max_err

    print("KERNEL_OK")
</pallas_src>

<mosaic_0001>
module attributes {stable_mosaic.version = 11 : i64} {
  func.func @_inception_kernel(%arg0: i32, %arg1: memref<2x8x392xf32, #tpu.memory_space<vmem>>, %arg2: memref<16x8xbf16, #tpu.memory_space<vmem>>, %arg3: memref<16x1xf32, #tpu.memory_space<vmem>>, %arg4: memref<16x1xf32, #tpu.memory_space<vmem>>, %arg5: memref<8x72xbf16, #tpu.memory_space<vmem>>, %arg6: memref<8x1xf32, #tpu.memory_space<vmem>>, %arg7: memref<8x1xf32, #tpu.memory_space<vmem>>, %arg8: memref<8x200xbf16, #tpu.memory_space<vmem>>, %arg9: memref<8x1xf32, #tpu.memory_space<vmem>>, %arg10: memref<8x1xf32, #tpu.memory_space<vmem>>, %arg11: memref<2x32x256xf32, #tpu.memory_space<vmem>>) attributes {dimension_semantics = [#tpu.dimension_semantics<arbitrary>], iteration_bounds = array<i64: 1>, scalar_prefetch = 0 : i64, scratch_operands = 0 : i64, tpu.core_type = #tpu.core_type<tc>, window_params = [{pipeline_mode = #tpu.pipeline_mode<synchronous>, transform_indices = @transform_0, window_bounds = array<i64: 2, 8, 392>}, {pipeline_mode = #tpu.pipeline_mode<synchronous>, transform_indices = @transform_1, window_bounds = array<i64: 16, 8>}, {pipeline_mode = #tpu.pipeline_mode<synchronous>, transform_indices = @transform_2, window_bounds = array<i64: 16, 1>}, {pipeline_mode = #tpu.pipeline_mode<synchronous>, transform_indices = @transform_3, window_bounds = array<i64: 16, 1>}, {pipeline_mode = #tpu.pipeline_mode<synchronous>, transform_indices = @transform_4, window_bounds = array<i64: 8, 72>}, {pipeline_mode = #tpu.pipeline_mode<synchronous>, transform_indices = @transform_5, window_bounds = array<i64: 8, 1>}, {pipeline_mode = #tpu.pipeline_mode<synchronous>, transform_indices = @transform_6, window_bounds = array<i64: 8, 1>}, {pipeline_mode = #tpu.pipeline_mode<synchronous>, transform_indices = @transform_7, window_bounds = array<i64: 8, 200>}, {pipeline_mode = #tpu.pipeline_mode<synchronous>, transform_indices = @transform_8, window_bounds = array<i64: 8, 1>}, {pipeline_mode = #tpu.pipeline_mode<synchronous>, transform_indices = @transform_9, window_bounds = array<i64: 8, 1>}, {pipeline_mode = #tpu.pipeline_mode<synchronous>, transform_indices = @transform_10, window_bounds = array<i64: 2, 32, 256>}]} {
    %0 = tpu.iota {dimensions = array<i32: 1>} : vector<1x356xi32>
    %c34_i32 = arith.constant 34 : i32
    %1 = vector.broadcast %c34_i32 : i32 to vector<1x356xi32>
    %2 = arith.subi %0, %1 : vector<1x356xi32>
    %c15_i32 = arith.constant 15 : i32
    %3 = vector.broadcast %c15_i32 : i32 to vector<1x356xi32>
    %4 = arith.andi %2, %3 : vector<1x356xi32>
    %c1_i32 = arith.constant 1 : i32
    %5 = vector.broadcast %c1_i32 : i32 to vector<1x356xi32>
    %6 = arith.cmpi sge, %4, %5 : vector<1x356xi32>
    %c14_i32 = arith.constant 14 : i32
    %7 = vector.broadcast %c14_i32 : i32 to vector<1x356xi32>
    %8 = arith.cmpi sle, %4, %7 : vector<1x356xi32>
    %9 = tpu.iota {dimensions = array<i32: 1>} : vector<1x324xi32>
    %c34_i32_0 = arith.constant 34 : i32
    %10 = vector.broadcast %c34_i32_0 : i32 to vector<1x324xi32>
    %11 = arith.subi %9, %10 : vector<1x324xi32>
    %c0_i32 = arith.constant 0 : i32
    %12 = vector.broadcast %c0_i32 : i32 to vector<1x324xi32>
    %13 = arith.cmpi sge, %11, %12 : vector<1x324xi32>
    %c256_i32 = arith.constant 256 : i32
    %14 = vector.broadcast %c256_i32 : i32 to vector<1x324xi32>
    %15 = arith.cmpi slt, %11, %14 : vector<1x324xi32>
    %16 = arith.andi %13, %15 : vector<1x324xi1>
    %17 = arith.extui %16 : vector<1x324xi1> to vector<1x324xi32>
    %18 = arith.sitofp %17 : vector<1x324xi32> to vector<1x324xf32>
    %19 = tpu.iota {dimensions = array<i32: 1>} : vector<1x320xi32>
    %c15_i32_1 = arith.constant 15 : i32
    %20 = vector.broadcast %c15_i32_1 : i32 to vector<1x320xi32>
    %21 = arith.andi %19, %20 : vector<1x320xi32>
    %c2_i32 = arith.constant 2 : i32
    %22 = vector.broadcast %c2_i32 : i32 to vector<1x320xi32>
    %23 = arith.cmpi sge, %21, %22 : vector<1x320xi32>
    %c1_i32_2 = arith.constant 1 : i32
    %24 = vector.broadcast %c1_i32_2 : i32 to vector<1x320xi32>
    %25 = arith.cmpi sge, %21, %24 : vector<1x320xi32>
    %c14_i32_3 = arith.constant 14 : i32
    %26 = vector.broadcast %c14_i32_3 : i32 to vector<1x320xi32>
    %27 = arith.cmpi sle, %21, %26 : vector<1x320xi32>
    %c13_i32 = arith.constant 13 : i32
    %28 = vector.broadcast %c13_i32 : i32 to vector<1x320xi32>
    %29 = arith.cmpi sle, %21, %28 : vector<1x320xi32>
    %30 = tpu.iota {dimensions = array<i32: 1>} : vector<1x288xi32>
    %c15_i32_4 = arith.constant 15 : i32
    %31 = vector.broadcast %c15_i32_4 : i32 to vector<1x288xi32>
    %32 = arith.andi %30, %31 : vector<1x288xi32>
    %c1_i32_5 = arith.constant 1 : i32
    %33 = vector.broadcast %c1_i32_5 : i32 to vector<1x288xi32>
    %34 = arith.cmpi sge, %32, %33 : vector<1x288xi32>
    %c14_i32_6 = arith.constant 14 : i32
    %35 = vector.broadcast %c14_i32_6 : i32 to vector<1x288xi32>
    %36 = arith.cmpi sle, %32, %35 : vector<1x288xi32>
    %37 = tpu.iota {dimensions = array<i32: 1>} : vector<1x256xi32>
    %c16_i32 = arith.constant 16 : i32
    %38 = vector.broadcast %c16_i32 : i32 to vector<1x256xi32>
    %39 = arith.cmpi sge, %37, %38 : vector<1x256xi32>
    %c240_i32 = arith.constant 240 : i32
    %40 = vector.broadcast %c240_i32 : i32 to vector<1x256xi32>
    %41 = arith.cmpi slt, %37, %40 : vector<1x256xi32>
    %c0 = arith.constant 0 : index
    %c0_7 = arith.constant 0 : index
    %c0_8 = arith.constant 0 : index
    %42 = vector.load %arg1[%c0, %c0_7, %c0_8] : memref<2x8x392xf32, #tpu.memory_space<vmem>>, vector<1x8x392xf32>
    %43 = vector.shape_cast %42 : vector<1x8x392xf32> to vector<8x392xf32>
    %44 = vector.extract_strided_slice %43 {offsets = [0, 68], sizes = [8, 256], strides = [1, 1]} : vector<8x392xf32> to vector<8x256xf32>
    %45 = vector.extract_strided_slice %43 {offsets = [0, 17], sizes = [8, 356], strides = [1, 1]} : vector<8x392xf32> to vector<8x356xf32>
    %cst = arith.constant 0.000000e+00 : f32
    %46 = vector.shape_cast %6 : vector<1x356xi1> to vector<1x356xi1>
    %47 = vector.broadcast %46 : vector<1x356xi1> to vector<8x356xi1>
    %48 = vector.broadcast %cst : f32 to vector<8x356xf32>
    %49 = arith.select %47, %45, %48 : vector<8x356xi1>, vector<8x356xf32>
    %50 = vector.extract_strided_slice %43 {offsets = [0, 18], sizes = [8, 356], strides = [1, 1]} : vector<8x392xf32> to vector<8x356xf32>
    %51 = vector.extract_strided_slice %43 {offsets = [0, 19], sizes = [8, 356], strides = [1, 1]} : vector<8x392xf32> to vector<8x356xf32>
    %cst_9 = arith.constant 0.000000e+00 : f32
    %52 = vector.shape_cast %8 : vector<1x356xi1> to vector<1x356xi1>
    %53 = vector.broadcast %52 : vector<1x356xi1> to vector<8x356xi1>
    %54 = vector.broadcast %cst_9 : f32 to vector<8x356xf32>
    %55 = arith.select %53, %51, %54 : vector<8x356xi1>, vector<8x356xf32>
    %56 = vector.extract_strided_slice %43 {offsets = [0, 51], sizes = [8, 288], strides = [1, 1]} : vector<8x392xf32> to vector<8x288xf32>
    %cst_10 = arith.constant 0xFF800000 : f32
    %57 = vector.shape_cast %34 : vector<1x288xi1> to vector<1x288xi1>
    %58 = vector.broadcast %57 : vector<1x288xi1> to vector<8x288xi1>
    %59 = vector.broadcast %cst_10 : f32 to vector<8x288xf32>
    %60 = arith.select %58, %56, %59 : vector<8x288xi1>, vector<8x288xf32>
    %61 = vector.extract_strided_slice %43 {offsets = [0, 52], sizes = [8, 288], strides = [1, 1]} : vector<8x392xf32> to vector<8x288xf32>
    %62 = vector.extract_strided_slice %43 {offsets = [0, 53], sizes = [8, 288], strides = [1, 1]} : vector<8x392xf32> to vector<8x288xf32>
    %cst_11 = arith.constant 0xFF800000 : f32
    %63 = vector.shape_cast %36 : vector<1x288xi1> to vector<1x288xi1>
    %64 = vector.broadcast %63 : vector<1x288xi1> to vector<8x288xi1>
    %65 = vector.broadcast %cst_11 : f32 to vector<8x288xf32>
    %66 = arith.select %64, %62, %65 : vector<8x288xi1>, vector<8x288xf32>
    %67 = vector.extract_strided_slice %60 {offsets = [0, 0], sizes = [8, 256], strides = [1, 1]} : vector<8x288xf32> to vector<8x256xf32>
    %68 = vector.extract_strided_slice %61 {offsets = [0, 0], sizes = [8, 256], strides = [1, 1]} : vector<8x288xf32> to vector<8x256xf32>
    %69 = arith.maximumf %67, %68 : vector<8x256xf32>
    %70 = vector.extract_strided_slice %66 {offsets = [0, 0], sizes = [8, 256], strides = [1, 1]} : vector<8x288xf32> to vector<8x256xf32>
    %71 = arith.maximumf %69, %70 : vector<8x256xf32>
    %cst_12 = arith.constant 0xFF800000 : f32
    %72 = vector.shape_cast %39 : vector<1x256xi1> to vector<1x256xi1>
    %73 = vector.broadcast %72 : vector<1x256xi1> to vector<8x256xi1>
    %74 = vector.broadcast %cst_12 : f32 to vector<8x256xf32>
    %75 = arith.select %73, %71, %74 : vector<8x256xi1>, vector<8x256xf32>
    %76 = vector.extract_strided_slice %60 {offsets = [0, 16], sizes = [8, 256], strides = [1, 1]} : vector<8x288xf32> to vector<8x256xf32>
    %77 = vector.extract_strided_slice %61 {offsets = [0, 16], sizes = [8, 256], strides = [1, 1]} : vector<8x288xf32> to vector<8x256xf32>
    %78 = arith.maximumf %76, %77 : vector<8x256xf32>
    %79 = vector.extract_strided_slice %66 {offsets = [0, 16], sizes = [8, 256], strides = [1, 1]} : vector<8x288xf32> to vector<8x256xf32>
    %80 = arith.maximumf %78, %79 : vector<8x256xf32>
    %81 = vector.extract_strided_slice %60 {offsets = [0, 32], sizes = [8, 256], strides = [1, 1]} : vector<8x288xf32> to vector<8x256xf32>
    %82 = vector.extract_strided_slice %61 {offsets = [0, 32], sizes = [8, 256], strides = [1, 1]} : vector<8x288xf32> to vector<8x256xf32>
    %83 = arith.maximumf %81, %82 : vector<8x256xf32>
    %84 = vector.extract_strided_slice %66 {offsets = [0, 32], sizes = [8, 256], strides = [1, 1]} : vector<8x288xf32> to vector<8x256xf32>
    %85 = arith.maximumf %83, %84 : vector<8x256xf32>
    %cst_13 = arith.constant 0xFF800000 : f32
    %86 = vector.shape_cast %41 : vector<1x256xi1> to vector<1x256xi1>
    %87 = vector.broadcast %86 : vector<1x256xi1> to vector<8x256xi1>
    %88 = vector.broadcast %cst_13 : f32 to vector<8x256xf32>
    %89 = arith.select %87, %85, %88 : vector<8x256xi1>, vector<8x256xf32>
    %90 = arith.maximumf %75, %80 : vector<8x256xf32>
    %91 = arith.maximumf %90, %89 : vector<8x256xf32>
    %c1 = arith.constant 1 : index
    %c0_14 = arith.constant 0 : index
    %c0_15 = arith.constant 0 : index
    %92 = vector.load %arg1[%c1, %c0_14, %c0_15] : memref<2x8x392xf32, #tpu.memory_space<vmem>>, vector<1x8x392xf32>
    %93 = vector.shape_cast %92 : vector<1x8x392xf32> to vector<8x392xf32>
    %94 = vector.extract_strided_slice %93 {offsets = [0, 68], sizes = [8, 256], strides = [1, 1]} : vector<8x392xf32> to vector<8x256xf32>
    %95 = vector.extract_strided_slice %93 {offsets = [0, 17], sizes = [8, 356], strides = [1, 1]} : vector<8x392xf32> to vector<8x356xf32>
    %cst_16 = arith.constant 0.000000e+00 : f32
    %96 = vector.shape_cast %6 : vector<1x356xi1> to vector<1x356xi1>
    %97 = vector.broadcast %96 : vector<1x356xi1> to vector<8x356xi1>
    %98 = vector.broadcast %cst_16 : f32 to vector<8x356xf32>
    %99 = arith.select %97, %95, %98 : vector<8x356xi1>, vector<8x356xf32>
    %100 = vector.extract_strided_slice %93 {offsets = [0, 18], sizes = [8, 356], strides = [1, 1]} : vector<8x392xf32> to vector<8x356xf32>
    %101 = vector.extract_strided_slice %93 {offsets = [0, 19], sizes = [8, 356], strides = [1, 1]} : vector<8x392xf32> to vector<8x356xf32>
    %cst_17 = arith.constant 0.000000e+00 : f32
    %102 = vector.shape_cast %8 : vector<1x356xi1> to vector<1x356xi1>
    %103 = vector.broadcast %102 : vector<1x356xi1> to vector<8x356xi1>
    %104 = vector.broadcast %cst_17 : f32 to vector<8x356xf32>
    %105 = arith.select %103, %101, %104 : vector<8x356xi1>, vector<8x356xf32>
    %106 = vector.extract_strided_slice %93 {offsets = [0, 51], sizes = [8, 288], strides = [1, 1]} : vector<8x392xf32> to vector<8x288xf32>
    %cst_18 = arith.constant 0xFF800000 : f32
    %107 = vector.shape_cast %34 : vector<1x288xi1> to vector<1x288xi1>
    %108 = vector.broadcast %107 : vector<1x288xi1> to vector<8x288xi1>
    %109 = vector.broadcast %cst_18 : f32 to vector<8x288xf32>
    %110 = arith.select %108, %106, %109 : vector<8x288xi1>, vector<8x288xf32>
    %111 = vector.extract_strided_slice %93 {offsets = [0, 52], sizes = [8, 288], strides = [1, 1]} : vector<8x392xf32> to vector<8x288xf32>
    %112 = vector.extract_strided_slice %93 {offsets = [0, 53], sizes = [8, 288], strides = [1, 1]} : vector<8x392xf32> to vector<8x288xf32>
    %cst_19 = arith.constant 0xFF800000 : f32
    %113 = vector.shape_cast %36 : vector<1x288xi1> to vector<1x288xi1>
    %114 = vector.broadcast %113 : vector<1x288xi1> to vector<8x288xi1>
    %115 = vector.broadcast %cst_19 : f32 to vector<8x288xf32>
    %116 = arith.select %114, %112, %115 : vector<8x288xi1>, vector<8x288xf32>
    %117 = vector.extract_strided_slice %110 {offsets = [0, 0], sizes = [8, 256], strides = [1, 1]} : vector<8x288xf32> to vector<8x256xf32>
    %118 = vector.extract_strided_slice %111 {offsets = [0, 0], sizes = [8, 256], strides = [1, 1]} : vector<8x288xf32> to vector<8x256xf32>
    %119 = arith.maximumf %117, %118 : vector<8x256xf32>
    %120 = vector.extract_strided_slice %116 {offsets = [0, 0], sizes = [8, 256], strides = [1, 1]} : vector<8x288xf32> to vector<8x256xf32>
    %121 = arith.maximumf %119, %120 : vector<8x256xf32>
    %cst_20 = arith.constant 0xFF800000 : f32
    %122 = vector.shape_cast %39 : vector<1x256xi1> to vector<1x256xi1>
    %123 = vector.broadcast %122 : vector<1x256xi1> to vector<8x256xi1>
    %124 = vector.broadcast %cst_20 : f32 to vector<8x256xf32>
    %125 = arith.select %123, %121, %124 : vector<8x256xi1>, vector<8x256xf32>
    %126 = vector.extract_strided_slice %110 {offsets = [0, 16], sizes = [8, 256], strides = [1, 1]} : vector<8x288xf32> to vector<8x256xf32>
    %127 = vector.extract_strided_slice %111 {offsets = [0, 16], sizes = [8, 256], strides = [1, 1]} : vector<8x288xf32> to vector<8x256xf32>
    %128 = arith.maximumf %126, %127 : vector<8x256xf32>
    %129 = vector.extract_strided_slice %116 {offsets = [0, 16], sizes = [8, 256], strides = [1, 1]} : vector<8x288xf32> to vector<8x256xf32>
    %130 = arith.maximumf %128, %129 : vector<8x256xf32>
    %131 = vector.extract_strided_slice %110 {offsets = [0, 32], sizes = [8, 256], strides = [1, 1]} : vector<8x288xf32> to vector<8x256xf32>
    %132 = vector.extract_strided_slice %111 {offsets = [0, 32], sizes = [8, 256], strides = [1, 1]} : vector<8x288xf32> to vector<8x256xf32>
    %133 = arith.maximumf %131, %132 : vector<8x256xf32>
    %134 = vector.extract_strided_slice %116 {offsets = [0, 32], sizes = [8, 256], strides = [1, 1]} : vector<8x288xf32> to vector<8x256xf32>
    %135 = arith.maximumf %133, %134 : vector<8x256xf32>
    %cst_21 = arith.constant 0xFF800000 : f32
    %136 = vector.shape_cast %41 : vector<1x256xi1> to vector<1x256xi1>
    %137 = vector.broadcast %136 : vector<1x256xi1> to vector<8x256xi1>
    %138 = vector.broadcast %cst_21 : f32 to vector<8x256xf32>
    %139 = arith.select %137, %135, %138 : vector<8x256xi1>, vector<8x256xf32>
    %140 = arith.maximumf %125, %130 : vector<8x256xf32>
    %141 = arith.maximumf %140, %139 : vector<8x256xf32>
    %142 = tpu.concatenate %44, %94 in 1 : vector<8x256xf32>, vector<8x256xf32> -> vector<8x512xf32>
    %143 = arith.truncf %142 : vector<8x512xf32> to vector<8x512xbf16>
    %c0_22 = arith.constant 0 : index
    %c0_23 = arith.constant 0 : index
    %144 = vector.load %arg2[%c0_22, %c0_23] : memref<16x8xbf16, #tpu.memory_space<vmem>>, vector<16x8xbf16>
    %cst_24 = arith.constant dense<0.000000e+00> : vector<16x512xf32>
    %145 = tpu.matmul %144, %143, %cst_24 {dimension_numbers = #tpu.dot_dimension_numbers<[1], [0], [0], [1], [0, 0, 1, 1], [], []>} : vector<16x8xbf16>, vector<8x512xbf16>, vector<16x512xf32> -> vector<16x512xf32>
    %c0_25 = arith.constant 0 : index
    %c0_26 = arith.constant 0 : index
    %146 = vector.load %arg3[%c0_25, %c0_26] : memref<16x1xf32, #tpu.memory_space<vmem>>, vector<16x1xf32>
    %147 = vector.broadcast %146 : vector<16x1xf32> to vector<16x512xf32>
    %148 = arith.mulf %145, %147 : vector<16x512xf32>
    %c0_27 = arith.constant 0 : index
    %c0_28 = arith.constant 0 : index
    %149 = vector.load %arg4[%c0_27, %c0_28] : memref<16x1xf32, #tpu.memory_space<vmem>>, vector<16x1xf32>
    %150 = vector.broadcast %149 : vector<16x1xf32> to vector<16x512xf32>
    %151 = arith.addf %148, %150 : vector<16x512xf32>
    %cst_29 = arith.constant 0.000000e+00 : f32
    %152 = vector.broadcast %cst_29 : f32 to vector<16x512xf32>
    %153 = arith.maximumf %151, %152 : vector<16x512xf32>
    %154 = vector.extract_strided_slice %153 {offsets = [0, 0], sizes = [8, 512], strides = [1, 1]} : vector<16x512xf32> to vector<8x512xf32>
    %155 = vector.extract_strided_slice %153 {offsets = [8, 0], sizes = [8, 512], strides = [1, 1]} : vector<16x512xf32> to vector<8x512xf32>
    %156 = vector.extract_strided_slice %49 {offsets = [0, 0], sizes = [8, 324], strides = [1, 1]} : vector<8x356xf32> to vector<8x324xf32>
    %157 = vector.extract_strided_slice %99 {offsets = [0, 0], sizes = [8, 324], strides = [1, 1]} : vector<8x356xf32> to vector<8x324xf32>
    %158 = tpu.concatenate %156, %157 in 1 : vector<8x324xf32>, vector<8x324xf32> -> vector<8x648xf32>
    %159 = vector.extract_strided_slice %50 {offsets = [0, 0], sizes = [8, 324], strides = [1, 1]} : vector<8x356xf32> to vector<8x324xf32>
    %160 = vector.extract_strided_slice %100 {offsets = [0, 0], sizes = [8, 324], strides = [1, 1]} : vector<8x356xf32> to vector<8x324xf32>
    %161 = tpu.concatenate %159, %160 in 1 : vector<8x324xf32>, vector<8x324xf32> -> vector<8x648xf32>
    %162 = vector.extract_strided_slice %55 {offsets = [0, 0], sizes = [8, 324], strides = [1, 1]} : vector<8x356xf32> to vector<8x324xf32>
    %163 = vector.extract_strided_slice %105 {offsets = [0, 0], sizes = [8, 324], strides = [1, 1]} : vector<8x356xf32> to vector<8x324xf32>
    %164 = tpu.concatenate %162, %163 in 1 : vector<8x324xf32>, vector<8x324xf32> -> vector<8x648xf32>
    %165 = vector.extract_strided_slice %49 {offsets = [0, 16], sizes = [8, 324], strides = [1, 1]} : vector<8x356xf32> to vector<8x324xf32>
    %166 = vector.extract_strided_slice %99 {offsets = [0, 16], sizes = [8, 324], strides = [1, 1]} : vector<8x356xf32> to vector<8x324xf32>
    %167 = tpu.concatenate %165, %166 in 1 : vector<8x324xf32>, vector<8x324xf32> -> vector<8x648xf32>
    %168 = vector.extract_strided_slice %50 {offsets = [0, 16], sizes = [8, 324], strides = [1, 1]} : vector<8x356xf32> to vector<8x324xf32>
    %169 = vector.extract_strided_slice %100 {offsets = [0, 16], sizes = [8, 324], strides = [1, 1]} : vector<8x356xf32> to vector<8x324xf32>
    %170 = tpu.concatenate %168, %169 in 1 : vector<8x324xf32>, vector<8x324xf32> -> vector<8x648xf32>
    %171 = vector.extract_strided_slice %55 {offsets = [0, 16], sizes = [8, 324], strides = [1, 1]} : vector<8x356xf32> to vector<8x324xf32>
    %172 = vector.extract_strided_slice %105 {offsets = [0, 16], sizes = [8, 324], strides = [1, 1]} : vector<8x356xf32> to vector<8x324xf32>
    %173 = tpu.concatenate %171, %172 in 1 : vector<8x324xf32>, vector<8x324xf32> -> vector<8x648xf32>
    %174 = vector.extract_strided_slice %49 {offsets = [0, 32], sizes = [8, 324], strides = [1, 1]} : vector<8x356xf32> to vector<8x324xf32>
    %175 = vector.extract_strided_slice %99 {offsets = [0, 32], sizes = [8, 324], strides = [1, 1]} : vector<8x356xf32> to vector<8x324xf32>
    %176 = tpu.concatenate %174, %175 in 1 : vector<8x324xf32>, vector<8x324xf32> -> vector<8x648xf32>
    %177 = vector.extract_strided_slice %50 {offsets = [0, 32], sizes = [8, 324], strides = [1, 1]} : vector<8x356xf32> to vector<8x324xf32>
    %178 = vector.extract_strided_slice %100 {offsets = [0, 32], sizes = [8, 324], strides = [1, 1]} : vector<8x356xf32> to vector<8x324xf32>
    %179 = tpu.concatenate %177, %178 in 1 : vector<8x324xf32>, vector<8x324xf32> -> vector<8x648xf32>
    %180 = vector.extract_strided_slice %55 {offsets = [0, 32], sizes = [8, 324], strides = [1, 1]} : vector<8x356xf32> to vector<8x324xf32>
    %181 = vector.extract_strided_slice %105 {offsets = [0, 32], sizes = [8, 324], strides = [1, 1]} : vector<8x356xf32> to vector<8x324xf32>
    %182 = tpu.concatenate %180, %181 in 1 : vector<8x324xf32>, vector<8x324xf32> -> vector<8x648xf32>
    %183 = tpu.concatenate %158, %161, %164, %167, %170, %173, %176, %179, %182 in 0 : vector<8x648xf32>, vector<8x648xf32>, vector<8x648xf32>, vector<8x648xf32>, vector<8x648xf32>, vector<8x648xf32>, vector<8x648xf32>, vector<8x648xf32>, vector<8x648xf32> -> vector<72x648xf32>
    %184 = arith.truncf %183 : vector<72x648xf32> to vector<72x648xbf16>
    %c0_30 = arith.constant 0 : index
    %c0_31 = arith.constant 0 : index
    %185 = vector.load %arg5[%c0_30, %c0_31] : memref<8x72xbf16, #tpu.memory_space<vmem>>, vector<8x72xbf16>
    %cst_32 = arith.constant dense<0.000000e+00> : vector<8x648xf32>
    %186 = tpu.matmul %185, %184, %cst_32 {dimension_numbers = #tpu.dot_dimension_numbers<[1], [0], [0], [1], [0, 0, 1, 1], [], []>} : vector<8x72xbf16>, vector<72x648xbf16>, vector<8x648xf32> -> vector<8x648xf32>
    %c0_33 = arith.constant 0 : index
    %c0_34 = arith.constant 0 : index
    %187 = vector.load %arg6[%c0_33, %c0_34] : memref<8x1xf32, #tpu.memory_space<vmem>>, vector<8x1xf32>
    %188 = vector.broadcast %187 : vector<8x1xf32> to vector<8x648xf32>
    %189 = arith.mulf %186, %188 : vector<8x648xf32>
    %c0_35 = arith.constant 0 : index
    %c0_36 = arith.constant 0 : index
    %190 = vector.load %arg7[%c0_35, %c0_36] : memref<8x1xf32, #tpu.memory_space<vmem>>, vector<8x1xf32>
    %191 = vector.broadcast %190 : vector<8x1xf32> to vector<8x648xf32>
    %192 = arith.addf %189, %191 : vector<8x648xf32>
    %cst_37 = arith.constant 0.000000e+00 : f32
    %193 = vector.broadcast %cst_37 : f32 to vector<8x648xf32>
    %194 = arith.maximumf %192, %193 : vector<8x648xf32>
    %195 = tpu.concatenate %18, %18 in 1 : vector<1x324xf32>, vector<1x324xf32> -> vector<1x648xf32>
    %196 = vector.broadcast %195 : vector<1x648xf32> to vector<8x648xf32>
    %197 = arith.mulf %194, %196 : vector<8x648xf32>
    %198 = vector.extract_strided_slice %197 {offsets = [0, 0], sizes = [8, 320], strides = [1, 1]} : vector<8x648xf32> to vector<8x320xf32>
    %cst_38 = arith.constant 0.000000e+00 : f32
    %199 = vector.shape_cast %23 : vector<1x320xi1> to vector<1x320xi1>
    %200 = vector.broadcast %199 : vector<1x320xi1> to vector<8x320xi1>
    %201 = vector.broadcast %cst_38 : f32 to vector<8x320xf32>
    %202 = arith.select %200, %198, %201 : vector<8x320xi1>, vector<8x320xf32>
    %203 = vector.extract_strided_slice %197 {offsets = [0, 1], sizes = [8, 320], strides = [1, 1]} : vector<8x648xf32> to vector<8x320xf32>
    %cst_39 = arith.constant 0.000000e+00 : f32
    %204 = vector.shape_cast %25 : vector<1x320xi1> to vector<1x320xi1>
    %205 = vector.broadcast %204 : vector<1x320xi1> to vector<8x320xi1>
    %206 = vector.broadcast %cst_39 : f32 to vector<8x320xf32>
    %207 = arith.select %205, %203, %206 : vector<8x320xi1>, vector<8x320xf32>
    %208 = vector.extract_strided_slice %197 {offsets = [0, 2], sizes = [8, 320], strides = [1, 1]} : vector<8x648xf32> to vector<8x320xf32>
    %209 = vector.extract_strided_slice %197 {offsets = [0, 3], sizes = [8, 320], strides = [1, 1]} : vector<8x648xf32> to vector<8x320xf32>
    %cst_40 = arith.constant 0.000000e+00 : f32
    %210 = vector.shape_cast %27 : vector<1x320xi1> to vector<1x320xi1>
    %211 = vector.broadcast %210 : vector<1x320xi1> to vector<8x320xi1>
    %212 = vector.broadcast %cst_40 : f32 to vector<8x320xf32>
    %213 = arith.select %211, %209, %212 : vector<8x320xi1>, vector<8x320xf32>
    %214 = vector.extract_strided_slice %197 {offsets = [0, 4], sizes = [8, 320], strides = [1, 1]} : vector<8x648xf32> to vector<8x320xf32>
    %cst_41 = arith.constant 0.000000e+00 : f32
    %215 = vector.shape_cast %29 : vector<1x320xi1> to vector<1x320xi1>
    %216 = vector.broadcast %215 : vector<1x320xi1> to vector<8x320xi1>
    %217 = vector.broadcast %cst_41 : f32 to vector<8x320xf32>
    %218 = arith.select %216, %214, %217 : vector<8x320xi1>, vector<8x320xf32>
    %219 = vector.extract_strided_slice %197 {offsets = [0, 324], sizes = [8, 320], strides = [1, 1]} : vector<8x648xf32> to vector<8x320xf32>
    %cst_42 = arith.constant 0.000000e+00 : f32
    %220 = vector.shape_cast %23 : vector<1x320xi1> to vector<1x320xi1>
    %221 = vector.broadcast %220 : vector<1x320xi1> to vector<8x320xi1>
    %222 = vector.broadcast %cst_42 : f32 to vector<8x320xf32>
    %223 = arith.select %221, %219, %222 : vector<8x320xi1>, vector<8x320xf32>
    %224 = vector.extract_strided_slice %197 {offsets = [0, 325], sizes = [8, 320], strides = [1, 1]} : vector<8x648xf32> to vector<8x320xf32>
    %cst_43 = arith.constant 0.000000e+00 : f32
    %225 = vector.shape_cast %25 : vector<1x320xi1> to vector<1x320xi1>
    %226 = vector.broadcast %225 : vector<1x320xi1> to vector<8x320xi1>
    %227 = vector.broadcast %cst_43 : f32 to vector<8x320xf32>
    %228 = arith.select %226, %224, %227 : vector<8x320xi1>, vector<8x320xf32>
    %229 = vector.extract_strided_slice %197 {offsets = [0, 326], sizes = [8, 320], strides = [1, 1]} : vector<8x648xf32> to vector<8x320xf32>
    %230 = vector.extract_strided_slice %197 {offsets = [0, 327], sizes = [8, 320], strides = [1, 1]} : vector<8x648xf32> to vector<8x320xf32>
    %cst_44 = arith.constant 0.000000e+00 : f32
    %231 = vector.shape_cast %27 : vector<1x320xi1> to vector<1x320xi1>
    %232 = vector.broadcast %231 : vector<1x320xi1> to vector<8x320xi1>
    %233 = vector.broadcast %cst_44 : f32 to vector<8x320xf32>
    %234 = arith.select %232, %230, %233 : vector<8x320xi1>, vector<8x320xf32>
    %235 = vector.extract_strided_slice %197 {offsets = [0, 328], sizes = [8, 320], strides = [1, 1]} : vector<8x648xf32> to vector<8x320xf32>
    %cst_45 = arith.constant 0.000000e+00 : f32
    %236 = vector.shape_cast %29 : vector<1x320xi1> to vector<1x320xi1>
    %237 = vector.broadcast %236 : vector<1x320xi1> to vector<8x320xi1>
    %238 = vector.broadcast %cst_45 : f32 to vector<8x320xf32>
    %239 = arith.select %237, %235, %238 : vector<8x320xi1>, vector<8x320xf32>
    %240 = vector.extract_strided_slice %202 {offsets = [0, 0], sizes = [8, 256], strides = [1, 1]} : vector<8x320xf32> to vector<8x256xf32>
    %241 = vector.extract_strided_slice %223 {offsets = [0, 0], sizes = [8, 256], strides = [1, 1]} : vector<8x320xf32> to vector<8x256xf32>
    %242 = tpu.concatenate %240, %241 in 1 : vector<8x256xf32>, vector<8x256xf32> -> vector<8x512xf32>
    %243 = vector.extract_strided_slice %207 {offsets = [0, 0], sizes = [8, 256], strides = [1, 1]} : vector<8x320xf32> to vector<8x256xf32>
    %244 = vector.extract_strided_slice %228 {offsets = [0, 0], sizes = [8, 256], strides = [1, 1]} : vector<8x320xf32> to vector<8x256xf32>
    %245 = tpu.concatenate %243, %244 in 1 : vector<8x256xf32>, vector<8x256xf32> -> vector<8x512xf32>
    %246 = vector.extract_strided_slice %208 {offsets = [0, 0], sizes = [8, 256], strides = [1, 1]} : vector<8x320xf32> to vector<8x256xf32>
    %247 = vector.extract_strided_slice %229 {offsets = [0, 0], sizes = [8, 256], strides = [1, 1]} : vector<8x320xf32> to vector<8x256xf32>
    %248 = tpu.concatenate %246, %247 in 1 : vector<8x256xf32>, vector<8x256xf32> -> vector<8x512xf32>
    %249 = vector.extract_strided_slice %213 {offsets = [0, 0], sizes = [8, 256], strides = [1, 1]} : vector<8x320xf32> to vector<8x256xf32>
    %250 = vector.extract_strided_slice %234 {offsets = [0, 0], sizes = [8, 256], strides = [1, 1]} : vector<8x320xf32> to vector<8x256xf32>
    %251 = tpu.concatenate %249, %250 in 1 : vector<8x256xf32>, vector<8x256xf32> -> vector<8x512xf32>
    %252 = vector.extract_strided_slice %218 {offsets = [0, 0], sizes = [8, 256], strides = [1, 1]} : vector<8x320xf32> to vector<8x256xf32>
    %253 = vector.extract_strided_slice %239 {offsets = [0, 0], sizes = [8, 256], strides = [1, 1]} : vector<8x320xf32> to vector<8x256xf32>
    %254 = tpu.concatenate %252, %253 in 1 : vector<8x256xf32>, vector<8x256xf32> -> vector<8x512xf32>
    %255 = vector.extract_strided_slice %202 {offsets = [0, 16], sizes = [8, 256], strides = [1, 1]} : vector<8x320xf32> to vector<8x256xf32>
    %256 = vector.extract_strided_slice %223 {offsets = [0, 16], sizes = [8, 256], strides = [1, 1]} : vector<8x320xf32> to vector<8x256xf32>
    %257 = tpu.concatenate %255, %256 in 1 : vector<8x256xf32>, vector<8x256xf32> -> vector<8x512xf32>
    %258 = vector.extract_strided_slice %207 {offsets = [0, 16], sizes = [8, 256], strides = [1, 1]} : vector<8x320xf32> to vector<8x256xf32>
    %259 = vector.extract_strided_slice %228 {offsets = [0, 16], sizes = [8, 256], strides = [1, 1]} : vector<8x320xf32> to vector<8x256xf32>
    %260 = tpu.concatenate %258, %259 in 1 : vector<8x256xf32>, vector<8x256xf32> -> vector<8x512xf32>
    %261 = vector.extract_strided_slice %208 {offsets = [0, 16], sizes = [8, 256], strides = [1, 1]} : vector<8x320xf32> to vector<8x256xf32>
    %262 = vector.extract_strided_slice %229 {offsets = [0, 16], sizes = [8, 256], strides = [1, 1]} : vector<8x320xf32> to vector<8x256xf32>
    %263 = tpu.concatenate %261, %262 in 1 : vector<8x256xf32>, vector<8x256xf32> -> vector<8x512xf32>
    %264 = vector.extract_strided_slice %213 {offsets = [0, 16], sizes = [8, 256], strides = [1, 1]} : vector<8x320xf32> to vector<8x256xf32>
    %265 = vector.extract_strided_slice %234 {offsets = [0, 16], sizes = [8, 256], strides = [1, 1]} : vector<8x320xf32> to vector<8x256xf32>
    %266 = tpu.concatenate %264, %265 in 1 : vector<8x256xf32>, vector<8x256xf32> -> vector<8x512xf32>
    %267 = vector.extract_strided_slice %218 {offsets = [0, 16], sizes = [8, 256], strides = [1, 1]} : vector<8x320xf32> to vector<8x256xf32>
    %268 = vector.extract_strided_slice %239 {offsets = [0, 16], sizes = [8, 256], strides = [1, 1]} : vector<8x320xf32> to vector<8x256xf32>
    %269 = tpu.concatenate %267, %268 in 1 : vector<8x256xf32>, vector<8x256xf32> -> vector<8x512xf32>
    %270 = vector.extract_strided_slice %202 {offsets = [0, 32], sizes = [8, 256], strides = [1, 1]} : vector<8x320xf32> to vector<8x256xf32>
    %271 = vector.extract_strided_slice %223 {offsets = [0, 32], sizes = [8, 256], strides = [1, 1]} : vector<8x320xf32> to vector<8x256xf32>
    %272 = tpu.concatenate %270, %271 in 1 : vector<8x256xf32>, vector<8x256xf32> -> vector<8x512xf32>
    %273 = vector.extract_strided_slice %207 {offsets = [0, 32], sizes = [8, 256], strides = [1, 1]} : vector<8x320xf32> to vector<8x256xf32>
    %274 = vector.extract_strided_slice %228 {offsets = [0, 32], sizes = [8, 256], strides = [1, 1]} : vector<8x320xf32> to vector<8x256xf32>
    %275 = tpu.concatenate %273, %274 in 1 : vector<8x256xf32>, vector<8x256xf32> -> vector<8x512xf32>
    %276 = vector.extract_strided_slice %208 {offsets = [0, 32], sizes = [8, 256], strides = [1, 1]} : vector<8x320xf32> to vector<8x256xf32>
    %277 = vector.extract_strided_slice %229 {offsets = [0, 32], sizes = [8, 256], strides = [1, 1]} : vector<8x320xf32> to vector<8x256xf32>
    %278 = tpu.concatenate %276, %277 in 1 : vector<8x256xf32>, vector<8x256xf32> -> vector<8x512xf32>
    %279 = vector.extract_strided_slice %213 {offsets = [0, 32], sizes = [8, 256], strides = [1, 1]} : vector<8x320xf32> to vector<8x256xf32>
    %280 = vector.extract_strided_slice %234 {offsets = [0, 32], sizes = [8, 256], strides = [1, 1]} : vector<8x320xf32> to vector<8x256xf32>
    %281 = tpu.concatenate %279, %280 in 1 : vector<8x256xf32>, vector<8x256xf32> -> vector<8x512xf32>
    %282 = vector.extract_strided_slice %218 {offsets = [0, 32], sizes = [8, 256], strides = [1, 1]} : vector<8x320xf32> to vector<8x256xf32>
    %283 = vector.extract_strided_slice %239 {offsets = [0, 32], sizes = [8, 256], strides = [1, 1]} : vector<8x320xf32> to vector<8x256xf32>
    %284 = tpu.concatenate %282, %283 in 1 : vector<8x256xf32>, vector<8x256xf32> -> vector<8x512xf32>
    %285 = vector.extract_strided_slice %202 {offsets = [0, 48], sizes = [8, 256], strides = [1, 1]} : vector<8x320xf32> to vector<8x256xf32>
    %286 = vector.extract_strided_slice %223 {offsets = [0, 48], sizes = [8, 256], strides = [1, 1]} : vector<8x320xf32> to vector<8x256xf32>
    %287 = tpu.concatenate %285, %286 in 1 : vector<8x256xf32>, vector<8x256xf32> -> vector<8x512xf32>
    %288 = vector.extract_strided_slice %207 {offsets = [0, 48], sizes = [8, 256], strides = [1, 1]} : vector<8x320xf32> to vector<8x256xf32>
    %289 = vector.extract_strided_slice %228 {offsets = [0, 48], sizes = [8, 256], strides = [1, 1]} : vector<8x320xf32> to vector<8x256xf32>
    %290 = tpu.concatenate %288, %289 in 1 : vector<8x256xf32>, vector<8x256xf32> -> vector<8x512xf32>
    %291 = vector.extract_strided_slice %208 {offsets = [0, 48], sizes = [8, 256], strides = [1, 1]} : vector<8x320xf32> to vector<8x256xf32>
    %292 = vector.extract_strided_slice %229 {offsets = [0, 48], sizes = [8, 256], strides = [1, 1]} : vector<8x320xf32> to vector<8x256xf32>
    %293 = tpu.concatenate %291, %292 in 1 : vector<8x256xf32>, vector<8x256xf32> -> vector<8x512xf32>
    %294 = vector.extract_strided_slice %213 {offsets = [0, 48], sizes = [8, 256], strides = [1, 1]} : vector<8x320xf32> to vector<8x256xf32>
    %295 = vector.extract_strided_slice %234 {offsets = [0, 48], sizes = [8, 256], strides = [1, 1]} : vector<8x320xf32> to vector<8x256xf32>
    %296 = tpu.concatenate %294, %295 in 1 : vector<8x256xf32>, vector<8x256xf32> -> vector<8x512xf32>
    %297 = vector.extract_strided_slice %218 {offsets = [0, 48], sizes = [8, 256], strides = [1, 1]} : vector<8x320xf32> to vector<8x256xf32>
    %298 = vector.extract_strided_slice %239 {offsets = [0, 48], sizes = [8, 256], strides = [1, 1]} : vector<8x320xf32> to vector<8x256xf32>
    %299 = tpu.concatenate %297, %298 in 1 : vector<8x256xf32>, vector<8x256xf32> -> vector<8x512xf32>
    %300 = vector.extract_strided_slice %202 {offsets = [0, 64], sizes = [8, 256], strides = [1, 1]} : vector<8x320xf32> to vector<8x256xf32>
    %301 = vector.extract_strided_slice %223 {offsets = [0, 64], sizes = [8, 256], strides = [1, 1]} : vector<8x320xf32> to vector<8x256xf32>
    %302 = tpu.concatenate %300, %301 in 1 : vector<8x256xf32>, vector<8x256xf32> -> vector<8x512xf32>
    %303 = vector.extract_strided_slice %207 {offsets = [0, 64], sizes = [8, 256], strides = [1, 1]} : vector<8x320xf32> to vector<8x256xf32>
    %304 = vector.extract_strided_slice %228 {offsets = [0, 64], sizes = [8, 256], strides = [1, 1]} : vector<8x320xf32> to vector<8x256xf32>
    %305 = tpu.concatenate %303, %304 in 1 : vector<8x256xf32>, vector<8x256xf32> -> vector<8x512xf32>
    %306 = vector.extract_strided_slice %208 {offsets = [0, 64], sizes = [8, 256], strides = [1, 1]} : vector<8x320xf32> to vector<8x256xf32>
    %307 = vector.extract_strided_slice %229 {offsets = [0, 64], sizes = [8, 256], strides = [1, 1]} : vector<8x320xf32> to vector<8x256xf32>
    %308 = tpu.concatenate %306, %307 in 1 : vector<8x256xf32>, vector<8x256xf32> -> vector<8x512xf32>
    %309 = vector.extract_strided_slice %213 {offsets = [0, 64], sizes = [8, 256], strides = [1, 1]} : vector<8x320xf32> to vector<8x256xf32>
    %310 = vector.extract_strided_slice %234 {offsets = [0, 64], sizes = [8, 256], strides = [1, 1]} : vector<8x320xf32> to vector<8x256xf32>
    %311 = tpu.concatenate %309, %310 in 1 : vector<8x256xf32>, vector<8x256xf32> -> vector<8x512xf32>
    %312 = vector.extract_strided_slice %218 {offsets = [0, 64], sizes = [8, 256], strides = [1, 1]} : vector<8x320xf32> to vector<8x256xf32>
    %313 = vector.extract_strided_slice %239 {offsets = [0, 64], sizes = [8, 256], strides = [1, 1]} : vector<8x320xf32> to vector<8x256xf32>
    %314 = tpu.concatenate %312, %313 in 1 : vector<8x256xf32>, vector<8x256xf32> -> vector<8x512xf32>
    %315 = tpu.concatenate %242, %245, %248, %251, %254, %257, %260, %263, %266, %269, %272, %275, %278, %281, %284, %287 in 0 : vector<8x512xf32>, vector<8x512xf32>, vector<8x512xf32>, vector<8x512xf32>, vector<8x512xf32>, vector<8x512xf32>, vector<8x512xf32>, vector<8x512xf32>, vector<8x512xf32>, vector<8x512xf32>, vector<8x512xf32>, vector<8x512xf32>, vector<8x512xf32>, vector<8x512xf32>, vector<8x512xf32>, vector<8x512xf32> -> vector<128x512xf32>
    %316 = tpu.concatenate %290, %293, %296, %299, %302, %305, %308, %311, %314 in 0 : vector<8x512xf32>, vector<8x512xf32>, vector<8x512xf32>, vector<8x512xf32>, vector<8x512xf32>, vector<8x512xf32>, vector<8x512xf32>, vector<8x512xf32>, vector<8x512xf32> -> vector<72x512xf32>
    %317 = tpu.concatenate %315, %316 in 0 : vector<128x512xf32>, vector<72x512xf32> -> vector<200x512xf32>
    %318 = arith.truncf %317 : vector<200x512xf32> to vector<200x512xbf16>
    %c0_46 = arith.constant 0 : index
    %c0_47 = arith.constant 0 : index
    %319 = vector.load %arg8[%c0_46, %c0_47] : memref<8x200xbf16, #tpu.memory_space<vmem>>, vector<8x200xbf16>
    %cst_48 = arith.constant dense<0.000000e+00> : vector<8x512xf32>
    %320 = tpu.matmul %319, %318, %cst_48 {dimension_numbers = #tpu.dot_dimension_numbers<[1], [0], [0], [1], [0, 0, 1, 1], [], []>} : vector<8x200xbf16>, vector<200x512xbf16>, vector<8x512xf32> -> vector<8x512xf32>
    %c0_49 = arith.constant 0 : index
    %c0_50 = arith.constant 0 : index
    %321 = vector.load %arg9[%c0_49, %c0_50] : memref<8x1xf32, #tpu.memory_space<vmem>>, vector<8x1xf32>
    %322 = vector.broadcast %321 : vector<8x1xf32> to vector<8x512xf32>
    %323 = arith.mulf %320, %322 : vector<8x512xf32>
    %c0_51 = arith.constant 0 : index
    %c0_52 = arith.constant 0 : index
    %324 = vector.load %arg10[%c0_51, %c0_52] : memref<8x1xf32, #tpu.memory_space<vmem>>, vector<8x1xf32>
    %325 = vector.broadcast %324 : vector<8x1xf32> to vector<8x512xf32>
    %326 = arith.addf %323, %325 : vector<8x512xf32>
    %cst_53 = arith.constant 0.000000e+00 : f32
    %327 = vector.broadcast %cst_53 : f32 to vector<8x512xf32>
    %328 = arith.maximumf %326, %327 : vector<8x512xf32>
    %329 = vector.extract_strided_slice %154 {offsets = [0, 0], sizes = [8, 256], strides = [1, 1]} : vector<8x512xf32> to vector<8x256xf32>
    %c0_54 = arith.constant 0 : index
    %c0_55 = arith.constant 0 : index
    %c0_56 = arith.constant 0 : index
    %330 = vector.load %arg11[%c0_54, %c0_55, %c0_56] : memref<2x32x256xf32, #tpu.memory_space<vmem>>, vector<1x8x256xf32>
    %331 = vector.shape_cast %330 : vector<1x8x256xf32> to vector<8x256xf32>
    %332 = vector.shape_cast %329 : vector<8x256xf32> to vector<1x8x256xf32>
    tpu.vector_store %arg11[%c0_54, %c0_55, %c0_56], %332 {strides = array<i32>} : memref<2x32x256xf32, #tpu.memory_space<vmem>>, vector<1x8x256xf32>,
    %333 = vector.extract_strided_slice %328 {offsets = [0, 0], sizes = [8, 256], strides = [1, 1]} : vector<8x512xf32> to vector<8x256xf32>
    %c0_57 = arith.constant 0 : index
    %c8 = arith.constant 8 : index
    %c0_58 = arith.constant 0 : index
    %334 = vector.load %arg11[%c0_57, %c8, %c0_58] : memref<2x32x256xf32, #tpu.memory_space<vmem>>, vector<1x8x256xf32>
    %335 = vector.shape_cast %334 : vector<1x8x256xf32> to vector<8x256xf32>
    %336 = vector.shape_cast %333 : vector<8x256xf32> to vector<1x8x256xf32>
    tpu.vector_store %arg11[%c0_57, %c8, %c0_58], %336 {strides = array<i32>} : memref<2x32x256xf32, #tpu.memory_space<vmem>>, vector<1x8x256xf32>,
    %337 = vector.extract_strided_slice %155 {offsets = [0, 0], sizes = [8, 256], strides = [1, 1]} : vector<8x512xf32> to vector<8x256xf32>
    %c0_59 = arith.constant 0 : index
    %c16 = arith.constant 16 : index
    %c0_60 = arith.constant 0 : index
    %338 = vector.load %arg11[%c0_59, %c16, %c0_60] : memref<2x32x256xf32, #tpu.memory_space<vmem>>, vector<1x8x256xf32>
    %339 = vector.shape_cast %338 : vector<1x8x256xf32> to vector<8x256xf32>
    %340 = vector.shape_cast %337 : vector<8x256xf32> to vector<1x8x256xf32>
    tpu.vector_store %arg11[%c0_59, %c16, %c0_60], %340 {strides = array<i32>} : memref<2x32x256xf32, #tpu.memory_space<vmem>>, vector<1x8x256xf32>,
    %c0_61 = arith.constant 0 : index
    %c24 = arith.constant 24 : index
    %c0_62 = arith.constant 0 : index
    %341 = vector.load %arg11[%c0_61, %c24, %c0_62] : memref<2x32x256xf32, #tpu.memory_space<vmem>>, vector<1x8x256xf32>
    %342 = vector.shape_cast %341 : vector<1x8x256xf32> to vector<8x256xf32>
    %343 = vector.shape_cast %91 : vector<8x256xf32> to vector<1x8x256xf32>
    tpu.vector_store %arg11[%c0_61, %c24, %c0_62], %343 {strides = array<i32>} : memref<2x32x256xf32, #tpu.memory_space<vmem>>, vector<1x8x256xf32>,
    %344 = vector.extract_strided_slice %154 {offsets = [0, 256], sizes = [8, 256], strides = [1, 1]} : vector<8x512xf32> to vector<8x256xf32>
    %c1_63 = arith.constant 1 : index
    %c0_64 = arith.constant 0 : index
    %c0_65 = arith.constant 0 : index
    %345 = vector.load %arg11[%c1_63, %c0_64, %c0_65] : memref<2x32x256xf32, #tpu.memory_space<vmem>>, vector<1x8x256xf32>
    %346 = vector.shape_cast %345 : vector<1x8x256xf32> to vector<8x256xf32>
    %347 = vector.shape_cast %344 : vector<8x256xf32> to vector<1x8x256xf32>
    tpu.vector_store %arg11[%c1_63, %c0_64, %c0_65], %347 {strides = array<i32>} : memref<2x32x256xf32, #tpu.memory_space<vmem>>, vector<1x8x256xf32>,
    %348 = vector.extract_strided_slice %328 {offsets = [0, 256], sizes = [8, 256], strides = [1, 1]} : vector<8x512xf32> to vector<8x256xf32>
    %c1_66 = arith.constant 1 : index
    %c8_67 = arith.constant 8 : index
    %c0_68 = arith.constant 0 : index
    %349 = vector.load %arg11[%c1_66, %c8_67, %c0_68] : memref<2x32x256xf32, #tpu.memory_space<vmem>>, vector<1x8x256xf32>
    %350 = vector.shape_cast %349 : vector<1x8x256xf32> to vector<8x256xf32>
    %351 = vector.shape_cast %348 : vector<8x256xf32> to vector<1x8x256xf32>
    tpu.vector_store %arg11[%c1_66, %c8_67, %c0_68], %351 {strides = array<i32>} : memref<2x32x256xf32, #tpu.memory_space<vmem>>, vector<1x8x256xf32>,
    %352 = vector.extract_strided_slice %155 {offsets = [0, 256], sizes = [8, 256], strides = [1, 1]} : vector<8x512xf32> to vector<8x256xf32>
    %c1_69 = arith.constant 1 : index
    %c16_70 = arith.constant 16 : index
    %c0_71 = arith.constant 0 : index
    %353 = vector.load %arg11[%c1_69, %c16_70, %c0_71] : memref<2x32x256xf32, #tpu.memory_space<vmem>>, vector<1x8x256xf32>
    %354 = vector.shape_cast %353 : vector<1x8x256xf32> to vector<8x256xf32>
    %355 = vector.shape_cast %352 : vector<8x256xf32> to vector<1x8x256xf32>
    tpu.vector_store %arg11[%c1_69, %c16_70, %c0_71], %355 {strides = array<i32>} : memref<2x32x256xf32, #tpu.memory_space<vmem>>, vector<1x8x256xf32>,
    %c1_72 = arith.constant 1 : index
    %c24_73 = arith.constant 24 : index
    %c0_74 = arith.constant 0 : index
    %356 = vector.load %arg11[%c1_72, %c24_73, %c0_74] : memref<2x32x256xf32, #tpu.memory_space<vmem>>, vector<1x8x256xf32>
    %357 = vector.shape_cast %356 : vector<1x8x256xf32> to vector<8x256xf32>
    %358 = vector.shape_cast %141 : vector<8x256xf32> to vector<1x8x256xf32>
    tpu.vector_store %arg11[%c1_72, %c24_73, %c0_74], %358 {strides = array<i32>} : memref<2x32x256xf32, #tpu.memory_space<vmem>>, vector<1x8x256xf32>,
    return
  }
  func.func @transform_0(%arg0: i32) -> (i32, i32, i32) {
    %c0_i32 = arith.constant 0 : i32
    %c0_i32_0 = arith.constant 0 : i32
    %c0_i32_1 = arith.constant 0 : i32
    %c0_i32_2 = arith.constant 0 : i32
    return %c0_i32, %c0_i32_0, %c0_i32_1 : i32, i32, i32
  }
  func.func @transform_1(%arg0: i32) -> (i32, i32) {
    %c0_i32 = arith.constant 0 : i32
    %c0_i32_0 = arith.constant 0 : i32
    %c0_i32_1 = arith.constant 0 : i32
    return %c0_i32, %c0_i32_0 : i32, i32
  }
  func.func @transform_2(%arg0: i32) -> (i32, i32) {
    %c0_i32 = arith.constant 0 : i32
    %c0_i32_0 = arith.constant 0 : i32
    %c0_i32_1 = arith.constant 0 : i32
    return %c0_i32, %c0_i32_0 : i32, i32
  }
  func.func @transform_3(%arg0: i32) -> (i32, i32) {
    %c0_i32 = arith.constant 0 : i32
    %c0_i32_0 = arith.constant 0 : i32
    %c0_i32_1 = arith.constant 0 : i32
    return %c0_i32, %c0_i32_0 : i32, i32
  }
  func.func @transform_4(%arg0: i32) -> (i32, i32) {
    %c0_i32 = arith.constant 0 : i32
    %c0_i32_0 = arith.constant 0 : i32
    %c0_i32_1 = arith.constant 0 : i32
    return %c0_i32, %c0_i32_0 : i32, i32
  }
  func.func @transform_5(%arg0: i32) -> (i32, i32) {
    %c0_i32 = arith.constant 0 : i32
    %c0_i32_0 = arith.constant 0 : i32
    %c0_i32_1 = arith.constant 0 : i32
    return %c0_i32, %c0_i32_0 : i32, i32
  }
  func.func @transform_6(%arg0: i32) -> (i32, i32) {
    %c0_i32 = arith.constant 0 : i32
    %c0_i32_0 = arith.constant 0 : i32
    %c0_i32_1 = arith.constant 0 : i32
    return %c0_i32, %c0_i32_0 : i32, i32
  }
  func.func @transform_7(%arg0: i32) -> (i32, i32) {
    %c0_i32 = arith.constant 0 : i32
    %c0_i32_0 = arith.constant 0 : i32
    %c0_i32_1 = arith.constant 0 : i32
    return %c0_i32, %c0_i32_0 : i32, i32
  }
  func.func @transform_8(%arg0: i32) -> (i32, i32) {
    %c0_i32 = arith.constant 0 : i32
    %c0_i32_0 = arith.constant 0 : i32
    %c0_i32_1 = arith.constant 0 : i32
    return %c0_i32, %c0_i32_0 : i32, i32
  }
  func.func @transform_9(%arg0: i32) -> (i32, i32) {
    %c0_i32 = arith.constant 0 : i32
    %c0_i32_0 = arith.constant 0 : i32
    %c0_i32_1 = arith.constant 0 : i32
    return %c0_i32, %c0_i32_0 : i32, i32
  }
  func.func @transform_10(%arg0: i32) -> (i32, i32, i32) {
    %c0_i32 = arith.constant 0 : i32
    %c0_i32_0 = arith.constant 0 : i32
    %c0_i32_1 = arith.constant 0 : i32
    %c0_i32_2 = arith.constant 0 : i32
    return %c0_i32, %c0_i32_0, %c0_i32_1 : i32, i32, i32
  }
}

</mosaic_0001>

<bundles_post_ra>
// kernel: tpu_custom_call.1
= control target key start
LH: loop header
LB: loop body
LE: loop exit
PB: predicated region body
PF: predicated region fallthrough
CT: control target
= control target key end

     0   :  { %s2442_s21 = smov 111   ;;  %s2443_s22 = smov 109   ;;  %s3862_s0 = inlined_call_operand.vmem [shape: f32[2,8,392], index: 0, kind: input, shape index: {}]   ;;  %s3863_s1 = inlined_call_operand.vmem [shape: bf16[16,8], index: 1, kind: input, shape index: {}]   ;;  %s3864_s2 = inlined_call_operand.vmem [shape: f32[16,1], index: 2, kind: input, shape index: {}]   ;;  %s3865_s3 = inlined_call_operand.vmem [shape: f32[16,1], index: 3, kind: input, shape index: {}]   ;;  %s3866_s4 = inlined_call_operand.vmem [shape: bf16[8,72], index: 4, kind: input, shape index: {}]   ;;  %s3867_s5 = inlined_call_operand.vmem [shape: f32[8,1], index: 5, kind: input, shape index: {}]   ;;  %s3868_s6 = inlined_call_operand.vmem [shape: f32[8,1], index: 6, kind: input, shape index: {}]   ;;  %s3869_s7 = inlined_call_operand.vmem [shape: bf16[8,200], index: 7, kind: input, shape index: {}]   ;;  %s3870_s8 = inlined_call_operand.vmem [shape: f32[8,1], index: 8, kind: input, shape index: {}]   ;;  %s3871_s9 = inlined_call_operand.vmem [shape: f32[8,1], index: 9, kind: input, shape index: {}]   ;;  %s3872_s10 = inlined_call_operand.hbm [shape: f32[2,32,256], index: 10, kind: output, shape index: {}]  }
   0x1   :  { %v2539_v0 = vld [vmem:[%s3862_s0 + $0x8] sm:$0xff]  ;;  %v2544_v1 = vld [vmem:[%s3862_s0 + $0x10] sm:$0xff]  ;;  %v2549_v2 = vld [vmem:[%s3862_s0] sm:$0xff] }
   0x2   :  { %v2553_v3 = vpack.i.bf16 %v2544_v1, %v2539_v0  ;;  %v1912_v4 = vpack.i.bf16 %v2539_v0, %v2549_v2  ;;  %v2560_v5 = vld [vmem:[%s3862_s0 + $0x20] sm:$0xff] }
   0x3   :  { %v1917_v6 = vpack.i.bf16 %v2560_v5, %v2544_v1  ;;  %v1927_v7 = vpack.i.bf16 %v2560_v5, %v2549_v2 }
   0x4   :  { %1923 = vrot.lane.b32.xlu1 %v2553_v3, %s2442_s21  ;;  %1913 = vrot.lane.b32.xlu0 %v1912_v4, %s2443_s22 }
   0x5   :  { %15 = vsyncpa [#allocation3], 0  ;;  %v2570_v8 = vld [vmem:[%s3862_s0 + $0x28] sm:$0xff]  ;;  %v2575_v9 = vld [vmem:[%s3862_s0 + $0x30] sm:$0xff]  ;;  %s2444_s27 = smov 78   ;;  %s2445_s28 = smov 94   ;;  %v37_v12 = vlaneseq }
   0x6   :  { %v1932_v10 = vpack.i.bf16 %v2575_v9, %v2570_v8  ;;  %s2446_s29 = smov 60   ;;  %v2447_v11 = vmov 0   ;;  %vm105_vm0 = vcmask 908288   ;;  %vm126_vm1 = vcmask 891904   ;;  %s2448_s30 = smov 96   ;;  %v933_v29 = vld [vmem:[%s3868_s6] sm:$0xff] }
   0x7   :  { %428 = vmatprep.mubr.bf16.mxu1 %v2447_v11  ;;  %830 = vmatprep.mubr.bf16.mxu0 %v2447_v11  ;;  %v2595_v13 = vand.u32 127, %v37_v12  ;;  %s2449_s11 = smov 110   ;;  %s2450_s12 = smov 18   ;;  %vm353_vm8 = vcmask 490496   ;;  %vm3878_vm9 = vcmask 1043456   ;;  %vm379_vm10 = vcmask 64512  }
   0x8   :  { %1918 = vrot.lane.b32.xlu0 %v1917_v6, %s2443_s22  ;;  %1928 = vrot.lane.b32.xlu1 %v1927_v7, %s2442_s21  ;;  %s2451_s13 = smov 112   ;;  %s2452_s14 = smov 36   ;;  %vm3896_vm13 = vcmask 785408   ;;  %vm3873_vm14 = vcmask 637952   ;;  %vm3883_vm15 = vcmask 769024  }
   0x9   :  { %2063 = vset.pattern.permute.xlu1 %v2447_v11  ;;  %2062 = vset.pattern.permute.xlu0 %v2447_v11  ;;  %3908 = vst [vmem:[#allocation5_spill] sm:$0xff] %v2595_v13  ;;  %v2598_v14 = vadd.s32 256, %v2595_v13  ;;  %v2601_v15 = vadd.s32 128, %v2595_v13  ;;  %v2608_v18 = vadd.s32 4294967262, %v2595_v13  ;;  %s2454_s17 = smov 34   ;;  %s2455_s18 = smov 68  }
   0xa   :  { %s2456_s19 = smov 50   ;;  %s2459_s6 = smov 77   ;;  %v2886_v49 = vld [vmem:[%s3866_s4] sm:$0xf] }
   0xb   :  { %3909 = vst [vmem:[#allocation6_spill] sm:$0xff] %v2601_v15  ;;  %v2604_v16 = vadd.s32 4294967262, %v2598_v14  ;;  %v1801_v17 = vadd.s32 4294967262, %v2601_v15  ;;  %v44_v23 = vand.u32 15, %v2608_v18  ;;  %vm53_vm11 = vcmp.ge.s32.totalorder %v2608_v18, 0  ;;  %s2460_s24 = smov 75  }
   0xc   :  { %1933 = vrot.lane.b32.xlu0 %v1932_v10, %s2443_s22  ;;  %1938 = vrot.lane.b32.xlu1 %v1932_v10, %s2442_s21  ;;  %s2463_s4 = smov 124   ;;  %s2466_s15 = smov 26  }
   0xd   :  { %v46_v20 = vand.u32 15, %v2604_v16  ;;  %v45_v22 = vand.u32 15, %v1801_v17  ;;  %vm2625_vm4 = vcmp.le.s32.totalorder %v44_v23, 14  ;;  %vm2671_vm7 = vcmp.ge.s32.totalorder %v44_v23, 1  ;;  %s2467_s16 = smov 58   ;;  %s2473_s20 = smov 122  }
   0xe   :  { %vm58_vm12 = vcmp.lt.s32.totalorder %v2604_v16, 256  ;;  %s2474_s21 = smov 57   ;;  %s2476_s22 = smov 64  }
   0xf   :  { %vm2612_vm2 = vcmp.le.s32.totalorder %v46_v20, 14  ;;  %vm2618_vm3 = vcmp.ge.s32.totalorder %v45_v22, 1  ;;  %vm2629_vm5 = vcmp.le.s32.totalorder %v45_v22, 14  ;;  %vm2665_vm6 = vcmp.ge.s32.totalorder %v46_v20, 1 }
  0x10   :  { %1943 = vrot.lane.b32.xlu1 %v2553_v3, %s2444_s27  ;;  %695 = vrot.lane.b32.xlu0 %v2549_v2, %s2444_s27 }
  0x14   :  { %1948 = vrot.lane.b32.xlu1 %v2553_v3, %s2445_s28  ;;  %1958 = vrot.lane.b32.xlu0 %v1917_v6, %s2446_s29 }
  0x18   :  { %1953 = vrot.lane.b32.xlu1 %v1912_v4, %s2446_s29  ;;  %1963 = vrot.lane.b32.xlu0 %v1932_v10, %s2446_s29 }
  0x1c   :  { %617 = vrot.lane.b32.xlu1 %v2549_v2, %s2445_s28 }
  0x76   :  { %v1924_v19 = vpop.permute.xlu1 %1923  ;;  %v1914_v21 = vpop.permute.xlu0 %1913 }
  0x77   :  { %v1926_v24 = vunpack.i.h.bf16 %v1924_v19  ;;  %v1925_v25 = vunpack.i.l.bf16 %v1924_v19  ;;  %v1916_v26 = vunpack.i.h.bf16 %v1914_v21  ;;  %v1915_v27 = vunpack.i.l.bf16 %v1914_v21 }
  0x79   :  { %v2623_v32 = vsel %vm105_vm0, %v1925_v25, %v1926_v24  ;;  %v2634_v36 = vsel %vm126_vm1, %v1915_v27, %v1916_v26  ;;  %v2685_v55 = vsel %vm2665_vm6, %v1926_v24, 0.0 }
  0x7a   :  { %v1919_v28 = vpop.permute.xlu0 %1918  ;;  %v2616_v30 = vpop.permute.xlu1 %1928  ;;  %v2644_v39 = vsel %vm2618_vm3, %v2623_v32, 0.0  ;;  %v2656_v43 = vsel %vm2625_vm4, %v2634_v36, 0.0 }
  0x7b   :  { %v1920_v33 = vunpack.i.l.bf16 %v1919_v28  ;;  %v1930_v38 = vunpack.i.l.bf16 %v2616_v30  ;;  %v1921_v54 = vunpack.i.h.bf16 %v1919_v28 }
  0x7d   :  { %v2638_v37 = vsel %vm2612_vm2, %v1920_v33, 0.0  ;;  %v2647_v40 = vsel %vm126_vm1, %v1916_v26, %v1920_v33  ;;  %v2676_v50 = vsel %vm105_vm0, %v1930_v38, %v1925_v25 }
  0x7e   :  { %v2649_v41 = vpop.permute.xlu0 %1933  ;;  %v1972_v42 = vpack.i.bf16 %v2644_v39, %v2638_v37  ;;  %v133_v44 = vsel %vm2629_vm5, %v2647_v40, 0.0  ;;  %v2661_v45 = vpop.permute.xlu1 %1938  ;;  %v111_v56 = vsel %vm2671_vm7, %v2676_v50, 0.0 }
  0x7f   :  { %v1967_v46 = vpack.i.bf16 %v133_v44, %v2656_v43  ;;  %v1935_v48 = vunpack.i.l.bf16 %v2649_v41  ;;  %v1936_v51 = vunpack.i.h.bf16 %v2649_v41  ;;  %v1941_v57 = vunpack.i.h.bf16 %v2661_v45 }
  0x80   :  { %1973 = vrot.lane.b32.xlu1 %v1972_v42, %s2448_s30  ;;  %v1940_v62 = vunpack.i.l.bf16 %v2661_v45  ;;  %v1982_v63 = vpack.i.bf16 %v111_v56, %v2685_v55  ;;  %v1987_v17 = vpack.i.bf16 %v2638_v37, %v133_v44  ;;  %v2457_v41 = vmov 0.0  }
  0x81   :  { %1968 = vrot.lane.b32.xlu0 %v1967_v46, %s2448_s30  ;;  %v263_v58 = vsel %vm126_vm1, %v1921_v54, %v1935_v48  ;;  %v264_v59 = vsel %vm126_vm1, %v1935_v48, %v1936_v51  ;;  %v256_v25 = vsel %vm2665_vm6, %v1941_v57, 0.0  ;;  %v1992_v48 = vpack.i.bf16 %v2644_v39, %v2656_v43 }
  0x82   :  { %v2679_v52 = vpop.permute.xlu1 %1943  ;;  %v2681_v53 = vpop.permute.xlu0 %695  ;;  %v269_v4 = vsel %vm2629_vm5, %v264_v59, 0.0  ;;  %v250_v6 = vsel %vm105_vm0, %v1940_v62, %v1941_v57  ;;  %v1931_v54 = vunpack.i.h.bf16 %v2616_v30  ;;  %v1997_v59 = vpack.i.bf16 %v2570_v8, %v2560_v5 }
  0x83   :  { %v255_v27 = vsel %vm2618_vm3, %v250_v6, 0.0  ;;  %v270_v5 = vsel %vm2612_vm2, %v1936_v51, 0.0  ;;  %v2753_v51 = vsel %vm53_vm11, 1.0, %v2457_v41  ;;  %vm3874_vm1 = vcmask 900096  }
  0x84   :  { %1978 = vrot.lane.b32.xlu1 %v2553_v3, %s2449_s11  ;;  %v268_v3 = vsel %vm2625_vm4, %v263_v58, 0.0  ;;  %v2022_v56 = vpack.i.bf16 %v256_v25, %v255_v27  ;;  %v2414_v58 = vld [vmem:[%s3863_s1] sm:$0xff]   ;;  %v249_v39 = vsel %vm105_vm0, %v1931_v54, %v1940_v62  ;;  %s2453_s1 = smov 52   ;;  %vm3882_vm0 = vcmask 916480  }
  0x85   :  { %547 = vrot.lane.b32.xlu0 %v2549_v2, %s2449_s11  ;;  %v2012_v26 = vpack.i.bf16 %v269_v4, %v268_v3  ;;  %v254_v8 = vsel %vm2671_vm7, %v249_v39, 0.0  ;;  %vm687_vm2 = vcmask 293888   ;;  %vm539_vm6 = vcmask 556032  }
  0x86   :  { %v2699_v60 = vpop.permute.xlu1 %1948  ;;  %v1959_v61 = vpop.permute.xlu0 %1958  ;;  %v2032_v43 = vpack.i.bf16 %v254_v8, %v270_v5 }
  0x87   :  { %v1961_v7 = vunpack.i.h.bf16 %v1959_v61  ;;  %v1960_v10 = vunpack.i.l.bf16 %v1959_v61  ;;  %v2458_v61 = vmov 1.0  }
  0x88   :  { %711 = vrot.lane.b32.xlu1 %v2575_v9, %s2450_s12  ;;  %v2064_v62 = vpack.i.bf16 %v2458_v61, %v2753_v51 }
  0x89   :  { %1983 = vrot.lane.b32.xlu0 %v1982_v63, %s2448_s30 }
  0x8a   :  { %v1954_v19 = vpop.permute.xlu1 %1953  ;;  %v1964_v20 = vpop.permute.xlu0 %1963 }
  0x8b   :  { %v1956_v21 = vunpack.i.h.bf16 %v1954_v19  ;;  %v1955_v22 = vunpack.i.l.bf16 %v1954_v19  ;;  %v1966_v23 = vunpack.i.h.bf16 %v1964_v20  ;;  %v1965_v24 = vunpack.i.l.bf16 %v1964_v20 }
  0x8c   :  { %2008 = vrot.lane.b32.xlu1 %v1982_v63, %s2451_s13  ;;  %v2761_v63 = vsel %vm58_vm12, 1.0, %v2457_v41 }
  0x8d   :  { %1988 = vrot.lane.b32.xlu0 %v1987_v17, %s2451_s13  ;;  %v355_v28 = vsel %vm353_vm8, %v1956_v21, %v1960_v10  ;;  %v354_v33 = vsel %vm353_vm8, %v1955_v22, %v1956_v21  ;;  %v365_v38 = vsel %vm353_vm8, %v1965_v24, %v1966_v23  ;;  %v364_v42 = vsel %vm353_vm8, %v1961_v7, %v1965_v24 }
  0x8e   :  { %v369_v44 = vpack.c.bf16 %v355_v28, %v355_v28  ;;  %v368_v45 = vpack.c.bf16 %v354_v33, %v354_v33  ;;  %v371_v46 = vpack.c.bf16 %v365_v38, %v365_v38  ;;  %v370_v47 = vpack.c.bf16 %v364_v42, %v364_v42  ;;  %v618_v16 = vpop.permute.xlu1 %617 }
  0x8f   :  { %v1946_v21 = vunpack.i.h.bf16 %v2679_v52  ;;  %v1945_v22 = vunpack.i.l.bf16 %v2679_v52  ;;  %v1951_v28 = vunpack.i.h.bf16 %v2699_v60  ;;  %v1950_v33 = vunpack.i.l.bf16 %v2699_v60 }
  0x90   :  { %2013 = vrot.lane.b32.xlu1 %v2012_v26, %s2452_s14  ;;  %1809 = vmatprep.subr.msk.bf16.mxu1 %vm3878_vm9, %v369_v44  ;;  %v385_v57 = vsel %vm3878_vm9, %v368_v45, 0  ;;  %v391_v30 = vsel %vm3878_vm9, %v370_v47, 0 }
  0x91   :  { %1993 = vrot.lane.b32.xlu0 %v1992_v48, %s2451_s13  ;;  %411 = vmatpush1.bf16.msra.mxu1 %v385_v57  ;;  %v702_v38 = vsel %vm3873_vm14, %v2681_v53, %v1945_v22  ;;  %v703_v45 = vsel %vm3873_vm14, %v1945_v22, %v1946_v21  ;;  %vm713_vm14 = vcmask 146432  }
  0x92   :  { %1811 = vmatprep.subr.msk.bf16.mxu1 %vm3878_vm9, %v371_v46 }
  0x94   :  { %2023 = vrot.lane.b32.xlu1 %v2022_v56, %s2452_s14  ;;  %1810 = vmatmul.mubr.msk.bf16.vlgmr.msra.gmra.mxu1 %vm379_vm10, %v2414_v58 }
  0x95   :  { %1998 = vrot.lane.b32.xlu0 %v1997_v59, %s2450_s12  ;;  %454 = vmatpush1.bf16.msra.mxu1 %v391_v30  ;;  %s2464_s12 = smov 125  }
  0x96   :  { %471 = vmatprep.mubr.bf16.mxu1 %v2447_v11 }
  0x98   :  { %2028 = vrot.lane.b32.xlu1 %v2012_v26, %s2453_s1 }
  0x99   :  { %2003 = vrot.lane.b32.xlu0 %v1997_v59, %s2454_s17 }
  0x9c   :  { %2033 = vrot.lane.b32.xlu1 %v2032_v43, %s2453_s1  ;;  %1812 = vmatmul.mubr.msk.bf16.vlgmr.msra.gmra.mxu1 %vm379_vm10, %v2414_v58  ;;  %v625_v58 = vsel %vm3883_vm15, %v1950_v33, %v1951_v28  ;;  %vm3880_vm10 = vmmov 1  }
  0x9d   :  { %2018 = vrot.lane.b32.xlu0 %v2032_v43, %s2452_s14  ;;  %871 = vmatprep.mubr.bf16.mxu1 %v2447_v11  ;;  %vm1814_vm11 = vmpackc.low %vm3880_vm10, %vm2629_vm5  ;;  %s2465_s14 = smov 127  }
  0x9e   :  { %vm1817_vm5 = vmpackc.low %vm3880_vm10, %vm2625_vm4  ;;  %vm609_vm4 = vcmask 424960  }
  0x9f   :  { %vm1820_vm12 = vmpackc.low %vm3880_vm10, %vm2618_vm3 }
  0xa0   :  { %2043 = vrot.lane.b32.xlu1 %v2022_v56, %s2453_s1  ;;  %vm1823_vm3 = vmpackc.low %vm3880_vm10, %vm2671_vm7  ;;  %vm565_vm7 = vcmask 408576   ;;  %s2468_s1 = smov 42  }
  0xa1   :  { %633 = vrot.lane.b32.xlu0 %v2575_v9, %s2454_s17  ;;  %s2469_s17 = smov 62  }
  0xa4   :  { %2058 = vrot.lane.b32.xlu1 %v2022_v56, %s2455_s18 }
  0xa5   :  { %2038 = vrot.lane.b32.xlu0 %v2012_v26, %s2455_s18 }
  0xa8   :  { %563 = vrot.lane.b32.xlu1 %v2575_v9, %s2456_s19  ;;  %v921_v9 = vld [vmem:[%s3867_s5] sm:$0xff]  ;;  %s2461_s5 = smov 76  }
  0xa9   :  { %2048 = vrot.lane.b32.xlu0 %v2032_v43, %s2455_s18  ;;  %v624_v43 = vsel %vm3883_vm15, %v618_v16, %v1950_v33  ;;  %vm1140_vm15 = vcmask 1031168  }
  0xac   :  { %936 = vperm.xlu1 %2063, %v933_v29  }
  0xad   :  { %2053 = vrot.lane.b32.xlu0 %v1997_v59, %s2456_s19  ;;  %s2472_s19 = smov 56  }
  0xb0   :  { %2065 = vrot.lane.b32.xlu1 %v2064_v62, %s2455_s18 }
  0xb1   :  { %924 = vperm.xlu0 %2062, %v921_v9  }
  0xb4   :  { %141 = vrot.lane.b32.xlu1 %v2549_v2, %s2459_s6 }
  0xb5   :  { %958 = vrot.lane.b32.xlu0 %v2761_v63, %s2455_s18  ;;  %s2470_s18 = smov 126  }
  0xb8   :  { %145 = vrot.lane.b32.xlu1 %v2544_v1, %s2459_s6 }
  0xb9   :  { %143 = vrot.lane.b32.xlu0 %v2539_v0, %s2459_s6 }
  0xbc   :  { %164 = vrot.lane.b32.xlu1 %v2539_v0, %s2460_s24 }
  0xbd   :  { %162 = vrot.lane.b32.xlu0 %v2549_v2, %s2460_s24 }
  0xc0   :  { %177 = vrot.lane.b32.xlu1 %v2549_v2, %s2461_s5 }
  0xc1   :  { %166 = vrot.lane.b32.xlu0 %v2544_v1, %s2460_s24 }
  0xc4   :  { %181 = vrot.lane.b32.xlu1 %v2544_v1, %s2461_s5 }
  0xc5   :  { %179 = vrot.lane.b32.xlu0 %v2539_v0, %s2461_s5 }
  0xf2   :  { %v1974_v18 = vpop.permute.xlu1 %1973 }
  0xf3   :  { %v1975_v3 = vunpack.i.l.bf16 %v1974_v18  ;;  %v1969_v4 = vpop.permute.xlu0 %1968  ;;  %v1976_v25 = vunpack.i.h.bf16 %v1974_v18 }
  0xf4   :  { %v1971_v6 = vunpack.i.h.bf16 %v1969_v4  ;;  %v1970_v7 = vunpack.i.l.bf16 %v1969_v4 }
  0xf6   :  { %v2782_v10 = vpop.permute.xlu1 %1978  ;;  %v728_v2 = vsel %vm3896_vm13, %v1971_v6, %v1975_v3  ;;  %v727_v17 = vsel %vm3896_vm13, %v1970_v7, %v1971_v6 }
  0xf7   :  { %v2786_v19 = vpop.permute.xlu0 %547  ;;  %v770_v20 = vpack.c.bf16 %v728_v2, %v728_v2  ;;  %v769_v1 = vpack.c.bf16 %v727_v17, %v727_v17  ;;  %v1981_v9 = vunpack.i.h.bf16 %v2782_v10  ;;  %v1980_v18 = vunpack.i.l.bf16 %v2782_v10 }
  0xf9   :  { %1813 = vmatprep.subr.msk.bf16.mxu0 %vm3878_vm9, %v770_v20  ;;  %v781_v0 = vsel %vm3878_vm9, %v769_v1, 0  ;;  %v555_v33 = vsel %vm3874_vm1, %v1980_v18, %v1981_v9 }
  0xfa   :  { %v2792_v23 = vpop.permute.xlu1 %711  ;;  %805 = vmatpush1.bf16.msra.mxu0 %v781_v0 }
  0xfb   :  { %v2794_v24 = vpop.permute.xlu0 %1983 }
  0xfc   :  { %v1986_v26 = vunpack.i.h.bf16 %v2794_v24  ;;  %v1985_v27 = vunpack.i.l.bf16 %v2794_v24 }
  0xfe   :  { %v2802_v42 = vpop.permute.xlu1 %2008  ;;  %v677_v44 = vsel %vm3896_vm13, %v1976_v25, %v1985_v27  ;;  %v676_v46 = vsel %vm3896_vm13, %v1986_v26, %v1976_v25 }
  0xff   :  { %v2811_v47 = vpop.permute.xlu0 %1988  ;;  %v764_v48 = vpack.c.bf16 %v703_v45, %v677_v44  ;;  %v763_v54 = vpack.c.bf16 %v702_v38, %v676_v46  ;;  %v2010_v29 = vunpack.i.l.bf16 %v2802_v42  ;;  %v2011_v7 = vunpack.i.h.bf16 %v2802_v42 }
 0x100   :  { %v1991_v53 = vunpack.i.h.bf16 %v2811_v47  ;;  %v1990_v56 = vunpack.i.l.bf16 %v2811_v47 }
 0x101   :  { %806 = vmatprep.subr.bf16.mxu0 %v764_v48  ;;  %v1821_v48 = vpack.c.bf16 %v555_v33, %v2623_v32 }
 0x102   :  { %v2815_v57 = vpop.permute.xlu1 %2013  ;;  %807 = vmatpush1.bf16.msra.mxu0 %v763_v54  ;;  %v653_v59 = vsel %vm3882_vm0, %v1990_v56, %v1991_v53 }
 0x103   :  { %v2016_v30 = vunpack.i.h.bf16 %v2815_v57  ;;  %v2015_v39 = vunpack.i.l.bf16 %v2815_v57  ;;  %v1994_v5 = vpop.permute.xlu0 %1993  ;;  %v758_v8 = vpack.c.bf16 %v653_v59, %v625_v58 }
 0x104   :  { %v1996_v41 = vunpack.i.h.bf16 %v1994_v5  ;;  %v1995_v62 = vunpack.i.l.bf16 %v1994_v5 }
 0x105   :  { %808 = vmatprep.subr.bf16.mxu0 %v758_v8  ;;  %v738_v4 = vsel %vm687_vm2, %v2015_v39, %v2016_v30  ;;  %v744_v6 = vsel %vm539_vm6, %v1975_v3, %v2015_v39 }
 0x106   :  { %v599_v16 = vsel %vm3882_vm0, %v1996_v41, %v2010_v29  ;;  %v2837_v2 = vpop.permute.xlu1 %2023  ;;  %v772_v17 = vpack.c.bf16 %v738_v4, %v738_v4  ;;  %v652_v20 = vsel %vm3882_vm0, %v1995_v62, %v1990_v56  ;;  %v771_v22 = vpack.c.bf16 %v744_v6, %v744_v6 }
 0x107   :  { %v2840_v1 = vpop.permute.xlu0 %1998  ;;  %v757_v0 = vpack.c.bf16 %v652_v20, %v624_v43  ;;  %v598_v3 = vsel %vm3882_vm0, %v2011_v7, %v1996_v41  ;;  %v1815_v25 = vpack.c.bf16 %v599_v16, %v2647_v40  ;;  %v554_v40 = vsel %vm3874_vm1, %v2786_v19, %v1980_v18 }
 0x108   :  { %1827 = vmatprep.subr.msk.bf16.mxu1 %vm3878_vm9, %v772_v17  ;;  %v787_v26 = vsel %vm3878_vm9, %v771_v22, 0  ;;  %v1818_v44 = vpack.c.bf16 %v598_v3, %v2634_v36  ;;  %v2001_v45 = vunpack.i.h.bf16 %v2840_v1  ;;  %v2000_v46 = vunpack.i.l.bf16 %v2840_v1 }
 0x109   :  { %809 = vmatpush1.bf16.msra.mxu0 %v757_v0  ;;  %846 = vmatpush1.bf16.msra.mxu1 %v787_v26  ;;  %v1824_v32 = vpack.c.bf16 %v554_v40, %v2676_v50  ;;  %vm3894_vm1 = vcmask 588800   ;;  %v2026_v58 = vunpack.i.h.bf16 %v2837_v2  ;;  %v2025_v59 = vunpack.i.l.bf16 %v2837_v2 }
 0x10a   :  { %v2852_v38 = vpop.permute.xlu1 %2028  ;;  %1816 = vmatprep.subr.msk.bf16.mxu0 %vm1814_vm11, %v1815_v25  ;;  %vm635_vm11 = vcmask 277504   ;;  %v720_v8 = vsel %vm539_vm6, %v1946_v21, %v2000_v46  ;;  %v714_v50 = vsel %vm713_vm14, %v2000_v46, %v2001_v45  ;;  %v715_v47 = vsel %vm713_vm14, %v2001_v45, %v2792_v23 }
 0x10b   :  { %v2857_v35 = vpop.permute.xlu0 %2003  ;;  %v2031_v34 = vunpack.i.h.bf16 %v2852_v38  ;;  %v2030_v54 = vunpack.i.l.bf16 %v2852_v38  ;;  %v689_v2 = vsel %vm687_vm2, %v2025_v59, %v2026_v58  ;;  %v768_v0 = vpack.c.bf16 %v2792_v23, %v2026_v58 }
 0x10c   :  { %v2006_v56 = vunpack.i.h.bf16 %v2857_v35  ;;  %v2005_v36 = vunpack.i.l.bf16 %v2857_v35  ;;  %v767_v35 = vpack.c.bf16 %v715_v47, %v689_v2  ;;  %vm3877_vm14 = vcmask 629760  }
 0x10d   :  { %1819 = vmatpush1.bf16.msk.msra.mxu0 %vm1817_vm5, %v1818_v44  ;;  %v663_v41 = vsel %vm609_vm4, %v2030_v54, %v2031_v34  ;;  %vm3876_vm5 = vcmask 621568  }
 0x10e   :  { %v2872_v31 = vpop.permute.xlu1 %2033  ;;  %1822 = vmatprep.subr.msk.bf16.mxu0 %vm1820_vm12, %v1821_v48  ;;  %v636_v43 = vsel %vm635_vm11, %v2005_v36, %v2006_v56  ;;  %v642_v57 = vsel %vm539_vm6, %v1951_v28, %v2005_v36  ;;  %vm3875_vm12 = vcmask 613376  }
 0x10f   :  { %v2019_v19 = vpop.permute.xlu0 %2018  ;;  %v760_v17 = vpack.c.bf16 %v663_v41, %v636_v43  ;;  %v2035_v60 = vunpack.i.l.bf16 %v2872_v31 }
 0x110   :  { %v2021_v39 = vunpack.i.h.bf16 %v2019_v19  ;;  %v2020_v5 = vunpack.i.l.bf16 %v2019_v19 }
 0x111   :  { %1825 = vmatpush1.bf16.msk.msra.mxu0 %vm1823_vm3, %v1824_v32  ;;  %v664_v42 = vsel %vm609_vm4, %v2031_v34, %v2035_v60 }
 0x112   :  { %v694_v52 = vsel %vm539_vm6, %v1985_v27, %v2021_v39  ;;  %v774_v62 = vpack.c.bf16 %v2020_v5, %v2020_v5  ;;  %v2044_v21 = vpop.permute.xlu1 %2043  ;;  %v688_v18 = vsel %vm687_vm2, %v2021_v39, %v2025_v59  ;;  %v739_v4 = vsel %vm687_vm2, %v2016_v30, %v2020_v5 }
 0x113   :  { %v634_v6 = vpop.permute.xlu0 %633  ;;  %v766_v7 = vpack.c.bf16 %v714_v50, %v688_v18  ;;  %v765_v16 = vpack.c.bf16 %v720_v8, %v694_v52  ;;  %v773_v24 = vpack.c.bf16 %v739_v4, %v739_v4  ;;  %v669_v27 = vsel %vm539_vm6, %v1991_v53, %v2030_v54 }
 0x114   :  { %1826 = vmatmul.mubr.msk.bf16.vlgmr.msra.gmra.mxu0 %vm3894_vm1, %v2886_v49  ;;  %1829 = vmatprep.subr.msk.bf16.mxu0 %vm3878_vm9, %v774_v62  ;;  %v2036_v30 = vunpack.i.h.bf16 %v2872_v31  ;;  %v2045_v20 = vunpack.i.l.bf16 %v2044_v21  ;;  %v759_v25 = vpack.c.bf16 %v669_v27, %v642_v57  ;;  %v2046_v26 = vunpack.i.h.bf16 %v2044_v21 }
 0x115   :  { %847 = vmatprep.subr.bf16.mxu1 %v766_v7  ;;  %912 = vmatprep.mubr.bf16.mxu0 %v2447_v11  ;;  %v793_v1 = vsel %vm3878_vm9, %v773_v24, 0  ;;  %v637_v33 = vsel %vm635_vm11, %v2006_v56, %v634_v6  ;;  %v762_v44 = vpack.c.bf16 %v2035_v60, %v634_v6 }
 0x116   :  { %848 = vmatpush1.bf16.msra.mxu1 %v765_v16  ;;  %887 = vmatpush1.bf16.msra.mxu0 %v793_v1  ;;  %v2059_v28 = vpop.permute.xlu1 %2058  ;;  %v616_v11 = vsel %vm539_vm6, %v2010_v29, %v2036_v30  ;;  %v610_v45 = vsel %vm609_vm4, %v2036_v30, %v2045_v20  ;;  %v761_v56 = vpack.c.bf16 %v664_v42, %v637_v33 }
 0x117   :  { %v2039_v53 = vpop.permute.xlu0 %2038  ;;  %849 = vmatprep.subr.bf16.mxu1 %v760_v17  ;;  %888 = vmatprep.subr.bf16.mxu0 %v768_v0  ;;  %v2061_v36 = vunpack.i.h.bf16 %v2059_v28  ;;  %v2060_v31 = vunpack.i.l.bf16 %v2059_v28  ;;  %v2954_v17 = vand.u32 15, %v2595_v13 }
 0x118   :  { %v2041_v22 = vunpack.i.h.bf16 %v2039_v53  ;;  %v2040_v3 = vunpack.i.l.bf16 %v2039_v53  ;;  %v2962_v53 = vand.u32 15, %v2601_v15 }
 0x119   :  { %v541_v8 = vsel %vm539_vm6, %v2060_v31, %v2061_v36  ;;  %vm74_vm2 = vcmp.ge.s32.totalorder %v2954_v17, 1  ;;  %vm3907_vm3 = vcmp.le.s32.totalorder %v2954_v17, 14  ;;  %vm80_vm13 = vcmp.le.s32.totalorder %v2954_v17, 13 }
 0x11a   :  { %v588_v23 = vsel %vm539_vm6, %v2638_v37, %v2040_v3  ;;  %850 = vmatpush1.bf16.msra.mxu1 %v759_v25  ;;  %v582_v40 = vsel %vm539_vm6, %v2040_v3, %v2041_v22  ;;  %889 = vmatpush1.bf16.msra.mxu0 %v767_v35  ;;  %v611_v37 = vsel %vm609_vm4, %v2045_v20, %v2046_v26  ;;  %v564_v19 = vpop.permute.xlu1 %563  ;;  %vm3897_vm4 = vcmp.ge.s32.totalorder %v2962_v53, 1 }
 0x11b   :  { %v2049_v46 = vpop.permute.xlu0 %2048  ;;  %v754_v48 = vpack.c.bf16 %v610_v45, %v582_v40  ;;  %v753_v54 = vpack.c.bf16 %v616_v11, %v588_v23  ;;  %890 = vmatprep.subr.bf16.mxu0 %v762_v44  ;;  %v750_v50 = vpack.c.bf16 %v564_v19, %v2061_v36  ;;  %vm3905_vm11 = vcmp.le.s32.totalorder %v2962_v53, 14 }
 0x11c   :  { %v2050_v29 = vunpack.i.l.bf16 %v2049_v46  ;;  %v2051_v32 = vunpack.i.h.bf16 %v2049_v46  ;;  %v968_v46 = vshrl.u32 %v37_v12, 7  ;;  %vm81_vm9 = vcmp.le.s32.totalorder %v2962_v53, 13 }
 0x11d   :  { %851 = vmatprep.subr.bf16.mxu1 %v754_v48 }
 0x11e   :  { %v583_v58 = vsel %vm539_vm6, %v2041_v22, %v2050_v29  ;;  %852 = vmatpush1.bf16.msra.mxu1 %v753_v54  ;;  %v756_v59 = vpack.c.bf16 %v2046_v26, %v2050_v29  ;;  %891 = vmatpush1.bf16.msra.mxu0 %v761_v56  ;;  %v546_v43 = vsel %vm539_vm6, %v2685_v55, %v2051_v32  ;;  %v2995_v54 = vsub.s32 0, %v968_v46 }
 0x11f   :  { %v2054_v39 = vpop.permute.xlu0 %2053  ;;  %v755_v5 = vpack.c.bf16 %v611_v37, %v583_v58  ;;  %v540_v52 = vsel %vm539_vm6, %v2051_v32, %v2060_v31  ;;  %v3057_v46 = vand.u32 15, %v2598_v14 }
 0x120   :  { %v2056_v38 = vunpack.i.h.bf16 %v2054_v39  ;;  %v2055_v34 = vunpack.i.l.bf16 %v2054_v39  ;;  %892 = vmatprep.subr.bf16.mxu0 %v756_v59  ;;  %v970_v31 = vrot.slane %v2753_v51, %v2995_v54 }
 0x121   :  { %vm3898_vm10 = vcmp.ge.s32.totalorder %v3057_v46, 1 }
 0x122   :  { %v572_v41 = vsel %vm539_vm6, %v1981_v9, %v2055_v34  ;;  %v566_v62 = vsel %vm565_vm7, %v2055_v34, %v2056_v38  ;;  %v567_v21 = vsel %vm565_vm7, %v2056_v38, %v564_v19  ;;  %893 = vmatpush1.bf16.msra.mxu0 %v755_v5  ;;  %vm3899_vm7 = vcmp.ge.s32.totalorder %v2962_v53, 2 }
 0x123   :  { %v748_v18 = vpack.c.bf16 %v566_v62, %v540_v52  ;;  %v747_v4 = vpack.c.bf16 %v572_v41, %v546_v43  ;;  %v749_v6 = vpack.c.bf16 %v567_v21, %v541_v8  ;;  %894 = vmatprep.subr.bf16.mxu0 %v750_v50 }
 0x125   :  { %853 = vmatprep.subr.bf16.mxu1 %v748_v18 }
 0x126   :  { %854 = vmatpush1.bf16.msra.mxu1 %v747_v4  ;;  %895 = vmatpush1.bf16.msra.mxu0 %v749_v6 }
 0x127   :  { %v2943_v10 = vpop.permute.xlu1 %936 }
 0x129   :  { %1828 = vmatmul.mubr.msk.bf16.vlgmr.msra.gmra.mxu1 %vm3894_vm1, %v2886_v49  ;;  %1830 = vmatmul.mubr.msk.bf16.vlgmr.msra.gmra.mxu0 %vm3894_vm1, %v2886_v49  ;;  %vm1124_vm1 = vcmask 457728  }
 0x12b   :  { %v2947_v7 = vpop.permute.xlu1 %2065 }
 0x12c   :  { %v2941_v55 = vpop.permute.xlu0 %924  ;;  %v2067_v38 = vunpack.i.l.bf16 %v2947_v7 }
 0x12e   :  { %v966_v52 = vsel %vm539_vm6, %v2761_v63, %v2067_v38 }
 0x12f   :  { %v142_v2 = vpop.permute.xlu1 %141 }
 0x130   :  { %v2945_v9 = vpop.permute.xlu0 %958 }
 0x133   :  { %v2949_v27 = vpop.permute.xlu1 %145 }
 0x134   :  { %v144_v16 = vpop.permute.xlu0 %143 }
 0x135   :  { %v148_v49 = vsel %vm3877_vm14, %v142_v2, %v144_v16  ;;  %v149_v3 = vsel %vm3877_vm14, %v144_v16, %v2949_v27  ;;  %v2068_v16 = vunpack.i.h.bf16 %v2947_v7  ;;  %vm1051_vm14 = vcmask 1014784  }
 0x136   :  { %v153_v0 = vsel %vm74_vm2, %v148_v49, -inf  ;;  %v154_v26 = vsel %vm3897_vm4, %v149_v3, -inf  ;;  %v978_v49 = vrot.slane %v966_v52, %v2995_v54 }
 0x137   :  { %v165_v30 = vpop.permute.xlu1 %164  ;;  %v960_v7 = vsel %vm539_vm6, %v2067_v38, %v2068_v16  ;;  %v990_v38 = vrot.slane %v2945_v9, %v2995_v54 }
 0x138   :  { %v163_v24 = vpop.permute.xlu0 %162 }
 0x139   :  { %v169_v60 = vsel %vm3875_vm12, %v163_v24, %v165_v30 }
 0x13a   :  { %v174_v22 = vsel %vm3907_vm3, %v169_v60, -inf }
 0x13b   :  { %v178_v1 = vpop.permute.xlu1 %177 }
 0x13c   :  { %v2951_v57 = vpop.permute.xlu0 %166 }
 0x13d   :  { %v170_v25 = vsel %vm3875_vm12, %v165_v30, %v2951_v57  ;;  %vm3879_vm12 = vcmask 506880  }
 0x13e   :  { %v175_v35 = vsel %vm3905_vm11, %v170_v25, -inf  ;;  %v961_v25 = vsel %vm539_vm6, %v2068_v16, %v2945_v9  ;;  %vm73_vm6 = vcmp.ge.s32.totalorder %v3057_v46, 2 }
 0x13f   :  { %v2980_v33 = vpop.permute.xlu1 %181 }
 0x140   :  { %v180_v20 = vpop.permute.xlu0 %179 }
 0x141   :  { %v184_v47 = vsel %vm3876_vm5, %v178_v1, %v180_v20  ;;  %v185_v44 = vsel %vm3876_vm5, %v180_v20, %v2980_v33  ;;  %vm82_vm5 = vcmp.le.s32.totalorder %v3057_v46, 13 }
 0x142   :  { %v188_v28 = vmax.f32 %v153_v0, %v184_v47  ;;  %v189_v23 = vmax.f32 %v154_v26, %v185_v44 }
 0x144   :  { %v2974_v11 = vmax.f32 %v188_v28, %v174_v22  ;;  %v2986_v40 = vmax.f32 %v189_v23, %v175_v35  ;;  %v974_v28 = vrot.slane %v2458_v61, %v2995_v54  ;;  %v982_v35 = vrot.slane %v960_v7, %v2995_v54 }
 0x145   :  { %v986_v61 = vrot.slane %v961_v25, %v2995_v54 }
 0x146   :  { %208 = vrot.lane.b32.xlu0 %v2974_v11, %s2448_s30  ;;  %210 = vrot.lane.b32.xlu1 %v2986_v40, %s2448_s30 }
 0x154   :  { %v2990_v45 = vpop.f32.mrf.mxu1 }
 0x155   :  { %3922 = vst [vmem:[#allocation7_spill] sm:$0xff] %v2990_v45 }
 0x156   :  { %v2993_v48 = vpop.f32.mrf.mxu1 }
 0x157   :  { %3923 = vst [vmem:[#allocation8_spill] sm:$0xff] %v2993_v48 }
 0x158   :  { %v2997_v42 = vpop.f32.mrf.mxu1 }
 0x159   :  { %3924 = vst [vmem:[#allocation9_spill] sm:$0xff] %v2997_v42 }
 0x15a   :  { %v3002_v32 = vpop.f32.mrf.mxu1 }
 0x15b   :  { %3925 = vst [vmem:[#allocation10_spill] sm:$0xff] %v3002_v32 }
 0x15c   :  { %v3005_v59 = vpop.f32.mrf.mxu1 }
 0x15d   :  { %3926 = vst [vmem:[#allocation11_spill] sm:$0xff] %v3005_v59 }
 0x15e   :  { %v3011_v5 = vpop.f32.mrf.mxu1 }
 0x15f   :  { %3927 = vst [vmem:[#allocation12_spill] sm:$0xff] %v3011_v5 }
 0x160   :  { %v3015_v51 = vpop.f32.mrf.mxu1 }
 0x161   :  { %3928 = vst [vmem:[#allocation13_spill] sm:$0xff] %v3015_v51 }
 0x162   :  { %v3020_v34 = vpop.f32.mrf.mxu1 }
 0x163   :  { %3929 = vst [vmem:[#allocation14_spill] sm:$0xff] %v3020_v34 }
 0x1b8   :  { %v3107_v54 = vpop.permute.xlu0 %208 }
 0x1b9   :  { %3930 = vst [vmem:[#allocation15_spill] sm:$0xff] %v3107_v54 }
 0x1d4   :  { %v832_v29 = vpop.f32.mrf.mxu0 }
 0x1d5   :  { %v927_v56 = vmul.f32 %v2941_v55, %v832_v29 }
 0x1d6   :  { %v834_v36 = vpop.f32.mrf.mxu0 }
 0x1d7   :  { %v939_v37 = vadd.f32 %v2943_v10, %v927_v56  ;;  %v928_v50 = vmul.f32 %v2941_v55, %v834_v36 }
 0x1d8   :  { %v836_v19 = vpop.f32.mrf.mxu0 }
 0x1d9   :  { %v945_v58 = vmax.f32 %v939_v37, 0.0  ;;  %v940_v24 = vadd.f32 %v2943_v10, %v928_v50 }
 0x1da   :  { %v837_v12 = vpop.f32.mrf.mxu0 }
 0x1db   :  { %v3007_v39 = vmul.f32 %v970_v31, %v945_v58  ;;  %v946_v22 = vmax.f32 %v940_v24, 0.0 }
 0x1dd   :  { %1045 = vrot.lane.b32.xlu0 %v3007_v39, %s2463_s4  ;;  %v3050_v44 = vmul.f32 %v974_v28, %v946_v22 }
 0x1df   :  { %v1004_v31 = vsel %vm3899_vm7, %v3050_v44, 0.0  ;;  %vm1151_vm7 = vcmask 474112  }
 0x1e1   :  { %1024 = vrot.lane.b32.xlu0 %v3007_v39, %s2464_s12 }
 0x1e5   :  { %1009 = vrot.lane.b32.xlu0 %v3007_v39, %s2465_s14 }
 0x1e9   :  { %v873_v8 = vpop.f32.mrf.mxu1  ;;  %1321 = vrot.lane.b32.xlu0 %v3007_v39, %s2445_s28  ;;  %v914_v41 = vpop.f32.mrf.mxu0 }
 0x1ea   :  { %v929_v43 = vmul.f32 %v2941_v55, %v873_v8  ;;  %v931_v18 = vmul.f32 %v2941_v55, %v914_v41 }
 0x1eb   :  { %v875_v62 = vpop.f32.mrf.mxu1  ;;  %v916_v6 = vpop.f32.mrf.mxu0 }
 0x1ec   :  { %v941_v21 = vadd.f32 %v2943_v10, %v929_v43  ;;  %v930_v4 = vmul.f32 %v2941_v55, %v875_v62  ;;  %v943_v47 = vadd.f32 %v2943_v10, %v931_v18  ;;  %v932_v19 = vmul.f32 %v2941_v55, %v916_v6  ;;  %v3117_v62 = vpop.permute.xlu1 %210 }
 0x1ed   :  { %v877_v2 = vpop.f32.mrf.mxu1  ;;  %1208 = vrot.lane.b32.xlu0 %v3007_v39, %s2449_s11  ;;  %v918_v20 = vpop.f32.mrf.mxu0  ;;  %3931 = vst [vmem:[#allocation16_spill] sm:$0xff] %v3117_v62 }
 0x1ee   :  { %v947_v30 = vmax.f32 %v941_v21, 0.0  ;;  %v942_v63 = vadd.f32 %v2943_v10, %v930_v4  ;;  %v949_v26 = vmax.f32 %v943_v47, 0.0  ;;  %v944_v58 = vadd.f32 %v2943_v10, %v932_v19 }
 0x1ef   :  { %v878_v1 = vpop.f32.mrf.mxu1  ;;  %v919_v60 = vpop.f32.mrf.mxu0 }
 0x1f0   :  { %v3037_v0 = vmul.f32 %v978_v49, %v947_v30  ;;  %v948_v3 = vmax.f32 %v942_v63, 0.0  ;;  %v995_v29 = vmul.f32 %v986_v61, %v949_v26  ;;  %v950_v12 = vmax.f32 %v944_v58, 0.0 }
 0x1f2   :  { %1331 = vrot.lane.b32.xlu1 %v3037_v0, %s2466_s15  ;;  %1145 = vrot.lane.b32.xlu0 %v3037_v0, %s2467_s16  ;;  %v994_v23 = vmul.f32 %v982_v35, %v948_v3  ;;  %v3061_v56 = vpack.i.bf16 %v3037_v0, %v3050_v44  ;;  %v1005_v14 = vsel %vm73_vm6, %v3037_v0, 0.0  ;;  %v996_v55 = vmul.f32 %v990_v38, %v950_v12 }
 0x1f3   :  { %v2104_v37 = vpack.i.bf16 %v1005_v14, %v1004_v31 }
 0x1f4   :  { %v3067_v36 = vpack.i.bf16 %v995_v29, %v994_v23  ;;  %v2154_v10 = vpack.i.bf16 %v3037_v0, %v996_v55  ;;  %v2179_v9 = vpack.i.bf16 %v996_v55, %v995_v29 }
 0x1f6   :  { %1218 = vrot.lane.b32.xlu1 %v3037_v0, %s2468_s1  ;;  %1525 = vrot.lane.b32.xlu0 %v3007_v39, %s2469_s17 }
 0x1fa   :  { %1134 = vrot.lane.b32.xlu1 %v3007_v39, %s2470_s18  ;;  %2085 = vrot.lane.b32.xlu0 %v3061_v56, %s2445_s28  ;;  %s2471_s28 = smov 80  }
 0x1fe   :  { %2100 = vrot.lane.b32.xlu0 %v3061_v56, %s2469_s17  ;;  %2070 = vrot.lane.b32.xlu1 %v3061_v56, %s2463_s4 }
 0x202   :  { %2075 = vrot.lane.b32.xlu1 %v3061_v56, %s2464_s12  ;;  %2105 = vrot.lane.b32.xlu0 %v2104_v37, %s2471_s28 }
 0x206   :  { %2080 = vrot.lane.b32.xlu1 %v3061_v56, %s2465_s14  ;;  %2115 = vrot.lane.b32.xlu0 %v2104_v37, %s2451_s13 }
 0x20a   :  { %2090 = vrot.lane.b32.xlu1 %v3061_v56, %s2449_s11  ;;  %2120 = vrot.lane.b32.xlu0 %v3067_v36, %s2446_s29  ;;  %s2475_s11 = smov 59  }
 0x20e   :  { %2095 = vrot.lane.b32.xlu1 %v3061_v56, %s2470_s18  ;;  %2125 = vrot.lane.b32.xlu0 %v3067_v36, %s2472_s19 }
 0x212   :  { %1536 = vrot.lane.b32.xlu1 %v994_v23, %s2473_s20  ;;  %2130 = vrot.lane.b32.xlu0 %v3067_v36, %s2474_s21 }
 0x216   :  { %2110 = vrot.lane.b32.xlu1 %v2104_v37, %s2448_s30  ;;  %2135 = vrot.lane.b32.xlu0 %v3067_v36, %s2475_s11 }
 0x21a   :  { %2140 = vrot.lane.b32.xlu1 %v3067_v36, %s2466_s15  ;;  %2145 = vrot.lane.b32.xlu0 %v3067_v36, %s2468_s1 }
 0x21e   :  { %2150 = vrot.lane.b32.xlu0 %v3067_v36, %s2467_s16  ;;  %2155 = vrot.lane.b32.xlu1 %v2154_v10, %s2446_s29  ;;  %s2477_s29 = smov 10  }
 0x222   :  { %2160 = vrot.lane.b32.xlu1 %v2154_v10, %s2472_s19 }
 0x226   :  { %2165 = vrot.lane.b32.xlu1 %v2154_v10, %s2474_s21 }
 0x22a   :  { %2170 = vrot.lane.b32.xlu1 %v2154_v10, %s2475_s11 }
 0x22e   :  { %2175 = vrot.lane.b32.xlu1 %v2104_v37, %s2476_s22 }
 0x232   :  { %2180 = vrot.lane.b32.xlu1 %v2179_v9, %s2473_s20 }
 0x24f   :  { %v3109_v8 = vpop.permute.xlu0 %1045 }
 0x253   :  { %v1025_v50 = vpop.permute.xlu0 %1024 }
 0x257   :  { %v3111_v43 = vpop.permute.xlu0 %1009 }
 0x25b   :  { %v3113_v41 = vpop.permute.xlu0 %1321 }
 0x25f   :  { %v3115_v52 = vpop.permute.xlu0 %1208 }
 0x264   :  { %v3119_v21 = vpop.permute.xlu1 %1331  ;;  %v3121_v18 = vpop.permute.xlu0 %1145 }
 0x268   :  { %v3123_v4 = vpop.permute.xlu1 %1218  ;;  %v1526_v6 = vpop.permute.xlu0 %1525 }
 0x269   :  { %3932 = vst [vmem:[#allocation17_spill] sm:$0xff] %v3123_v4 }
 0x26c   :  { %v1135_v16 = vpop.permute.xlu1 %1134  ;;  %v3125_v2 = vpop.permute.xlu0 %2085 }
 0x270   :  { %v3127_v24 = vpop.permute.xlu0 %2100  ;;  %v3130_v30 = vpop.permute.xlu1 %2070 }
 0x271   :  { %v3884_v49 = vunpack.i.l.bf16 %v3127_v24  ;;  %v2073_v63 = vunpack.i.h.bf16 %v3130_v30  ;;  %v3887_v20 = vunpack.i.l.bf16 %v3130_v30  ;;  %v3937_v59 = vunpack.i.l.bf16 %v3130_v30 }
 0x273   :  { %v3139_v1 = vsel %vm3879_vm12, %v1526_v6, %v3884_v49  ;;  %v3143_v47 = vsel %vm82_vm5, %v2073_v63, 0.0  ;;  %v3148_v60 = vsel %vm1051_vm14, %v3887_v20, %v2073_v63  ;;  %vm1015_vm12 = vcmask 1039360  }
 0x274   :  { %3933 = vst [vmem:[#allocation18_spill] sm:$0xff] %v3139_v1  ;;  %v3150_v7 = vpop.permute.xlu1 %2075  ;;  %v3152_v28 = vpop.permute.xlu0 %2105  ;;  %v3157_v22 = vsel %vm81_vm9, %v3148_v60, 0.0 }
 0x275   :  { %v3161_v3 = vpack.i.bf16 %v3143_v47, %v3157_v22  ;;  %v2078_v55 = vunpack.i.h.bf16 %v3150_v7  ;;  %v2077_v10 = vunpack.i.l.bf16 %v3150_v7 }
 0x277   :  { %2185 = vrot.lane.b32.xlu0 %v3161_v3, %s2448_s30 }
 0x278   :  { %v3165_v25 = vpop.permute.xlu1 %2080  ;;  %v3167_v26 = vpop.permute.xlu0 %2115 }
 0x279   :  { %v2083_v35 = vunpack.i.h.bf16 %v3165_v25  ;;  %v3886_v61 = vunpack.i.l.bf16 %v3165_v25  ;;  %v2118_v23 = vunpack.i.h.bf16 %v3167_v26  ;;  %v3885_v29 = vunpack.i.l.bf16 %v3167_v26 }
 0x27b   :  { %v3177_v14 = vsel %vm1015_vm12, %v3886_v61, %v2083_v35  ;;  %v3182_v31 = vsel %vm3882_vm0, %v3885_v29, %v2118_v23  ;;  %v1023_v37 = vsel %vm3898_vm10, %v2083_v35, 0.0  ;;  %vm1030_vm0 = vcmask 1022976  }
 0x27c   :  { %v1022_v19 = vsel %vm3897_vm4, %v3177_v14, 0.0  ;;  %v3189_v58 = vpop.permute.xlu1 %2090  ;;  %v3191_v12 = vpop.permute.xlu0 %2120  ;;  %v3199_v49 = vsel %vm1030_vm0, %v1025_v50, %v2077_v10  ;;  %v3201_v29 = vsel %vm1030_vm0, %v2077_v10, %v2078_v55  ;;  %vm1088_vm0 = vcmask 482304  }
 0x27d   :  { %v3197_v9 = vpack.i.bf16 %v1023_v37, %v1022_v19  ;;  %v2122_v50 = vunpack.i.l.bf16 %v3191_v12  ;;  %vm3906_vm4 = vcmp.le.s32.totalorder %v3057_v46, 14  ;;  %vm1106_vm10 = vcmask 465920  }
 0x280   :  { %v2096_v6 = vpop.permute.xlu1 %2095  ;;  %v2126_v63 = vpop.permute.xlu0 %2125 }
 0x281   :  { %v2098_v35 = vunpack.i.h.bf16 %v2096_v6  ;;  %v2097_v23 = vunpack.i.l.bf16 %v2096_v6  ;;  %v3893_v6 = vunpack.i.h.bf16 %v3191_v12  ;;  %v2127_v51 = vunpack.i.l.bf16 %v2126_v63 }
 0x283   :  { %v3203_v61 = vsel %vm1140_vm15, %v1135_v16, %v2097_v23  ;;  %v3205_v20 = vsel %vm1140_vm15, %v2097_v23, %v2098_v35  ;;  %v3226_v7 = vsel %vm353_vm8, %v2122_v50, %v3893_v6  ;;  %vm71_vm15 = vcmp.ge.s32.totalorder %v2954_v17, 2 }
 0x284   :  { %v3211_v37 = vpop.permute.xlu1 %1536  ;;  %v3213_v19 = vpop.permute.xlu0 %2130  ;;  %v2128_v6 = vunpack.i.h.bf16 %v2126_v63  ;;  %v1003_v5 = vsel %vm71_vm15, %v3007_v39, 0.0  ;;  %v3259_v63 = vsel %vm1051_vm14, %v3109_v8, %v3937_v59  ;;  %vm3946_vm14 = vcmp.ge.s32.totalorder %v2962_v53, 1 }
 0x285   :  { %3934 = vst [vmem:[#allocation19_spill] sm:$0xff] %v3211_v37  ;;  %v2132_v8 = vunpack.i.l.bf16 %v3213_v19 }
 0x286   :  { %v3265_v45 = vsel %vm1124_vm1, %v2127_v51, %v2128_v6 }
 0x287   :  { %3938 = vst [vmem:[#allocation22_spill] sm:$0xff] %v3265_v45 }
 0x288   :  { %v3217_v10 = vpop.permute.xlu1 %2110  ;;  %v3219_v16 = vpop.permute.xlu0 %2135 }
 0x289   :  { %v3895_v35 = vunpack.i.h.bf16 %v3219_v16  ;;  %v2137_v23 = vunpack.i.l.bf16 %v3219_v16 }
 0x28b   :  { %v3231_v38 = vsel %vm1088_vm0, %v2137_v23, %v3895_v35 }
 0x28c   :  { %v3235_v54 = vpop.permute.xlu1 %2140  ;;  %v3237_v62 = vpop.permute.xlu0 %2145 }
 0x28d   :  { %3935 = vst [vmem:[#allocation20_spill] sm:$0xff] %v3237_v62 }
 0x290   :  { %v3239_v13 = vpop.permute.xlu1 %2155  ;;  %v3246_v35 = vpop.permute.xlu0 %2150 }
 0x291   :  { %v2158_v34 = vunpack.i.h.bf16 %v3239_v13  ;;  %3936 = vst [vmem:[#allocation21_spill] sm:$0xff] %v3246_v35 }
 0x293   :  { %v3244_v32 = vsel %vm353_vm8, %v2158_v34, %v2122_v50 }
 0x294   :  { %v1077_v15 = vsel %vm71_vm15, %v3244_v32, 0.0  ;;  %v2161_v42 = vpop.permute.xlu1 %2160 }
 0x295   :  { %v2163_v34 = vunpack.i.h.bf16 %v2161_v42  ;;  %v2162_v50 = vunpack.i.l.bf16 %v2161_v42  ;;  %v3261_v48 = vpack.i.bf16 %v1077_v15, %v1003_v5  ;;  %v1057_v5 = vsel %vm80_vm13, %v3259_v63, 0.0 }
 0x297   :  { %v3269_v4 = vsel %vm1124_vm1, %v2163_v34, %v2127_v51  ;;  %v1127_v30 = vsel %vm1124_vm1, %v2128_v6, %v2162_v50  ;;  %2195 = vrot.lane.b32.xlu1 %v3261_v48, %s2471_s28  ;;  %v1132_v51 = vsel %vm81_vm9, %v3265_v45, 0.0  ;;  %v1038_v50 = vsel %vm3906_vm4, %v2078_v55, 0.0 }
 0x298   :  { %3939 = vst [vmem:[#allocation23_spill] sm:$0xff] %v3269_v4  ;;  %v1131_v15 = vsel %vm80_vm13, %v3269_v4, 0.0  ;;  %v1133_v42 = vsel %vm82_vm5, %v1127_v30, 0.0  ;;  %v2166_v59 = vpop.permute.xlu1 %2165  ;;  %v1037_v30 = vsel %vm3905_vm11, %v3201_v29, 0.0  ;;  %v3940_v4 = vunpack.i.l.bf16 %v3246_v35 }
 0x299   :  { %v2168_v6 = vunpack.i.h.bf16 %v2166_v59  ;;  %v3286_v34 = vpack.i.bf16 %v1131_v15, %v1057_v5  ;;  %v3293_v37 = vpack.i.bf16 %v1133_v42, %v1132_v51  ;;  %v2199_v1 = vpack.i.bf16 %v1038_v50, %v1037_v30 }
 0x29a   :  { %v3299_v62 = vsel %vm1151_vm7, %v3121_v18, %v3940_v4  ;;  %v3941_v4 = vunpack.i.l.bf16 %v3165_v25  ;;  %v1036_v50 = vsel %vm3907_vm3, %v3199_v49, 0.0  ;;  %vm3945_vm1 = vcmp.ge.s32.totalorder %v3057_v46, 1 }
 0x29b   :  { %v3302_v45 = vsel %vm1106_vm10, %v2168_v6, %v2132_v8  ;;  %2190 = vrot.lane.b32.xlu0 %v3286_v34, %s2448_s30  ;;  %2210 = vrot.lane.b32.xlu1 %v3197_v9, %s2448_s30  ;;  %vm3947_vm5 = vcmask 785408  }
 0x29c   :  { %v2171_v42 = vpop.permute.xlu1 %2170  ;;  %v1113_v18 = vsel %vm3907_vm3, %v3302_v45, 0.0  ;;  %v3317_v6 = vsel %vm1015_vm12, %v3111_v43, %v3941_v4  ;;  %v2157_v4 = vunpack.i.l.bf16 %v3239_v13  ;;  %v2167_v43 = vunpack.i.l.bf16 %v2166_v59 }
 0x29d   :  { %v2173_v51 = vunpack.i.h.bf16 %v2171_v42  ;;  %v2204_v30 = vpack.i.bf16 %v1113_v18, %v1036_v50  ;;  %v2264_v18 = vpack.i.bf16 %v1131_v15, %v3143_v47  ;;  %v2259_v50 = vpack.i.bf16 %v3157_v22, %v1057_v5 }
 0x29e   :  { %v2172_v55 = vunpack.i.l.bf16 %v2171_v42  ;;  %v2133_v47 = vunpack.i.h.bf16 %v3213_v19  ;;  %vm3948_vm12 = vcmask 588800  }
 0x29f   :  { %v3320_v35 = vsel %vm1088_vm0, %v2173_v51, %v2137_v23  ;;  %2200 = vrot.lane.b32.xlu0 %v2199_v1, %s2448_s30  ;;  %2215 = vrot.lane.b32.xlu1 %v3261_v48, %s2448_s30  ;;  %v1021_v23 = vsel %vm74_vm2, %v3317_v6, 0.0 }
 0x2a0   :  { %v1095_v25 = vsel %vm74_vm2, %v3320_v35, 0.0  ;;  %v1109_v15 = vsel %vm1106_vm10, %v2133_v47, %v2167_v43  ;;  %v3376_v19 = vsel %vm1106_vm10, %v2132_v8, %v2133_v47  ;;  %v1096_v8 = vsel %vm3946_vm14, %v3231_v38, 0.0  ;;  %v483_v47 = vld [vmem:[%s3864_s2 + $0x8] sm:$0xff]  ;;  %vm3953_vm14 = vmmov %vm3947_vm5 }
 0x2a1   :  { %v3338_v51 = vpack.i.bf16 %v1095_v25, %v1021_v23  ;;  %v3942_v25 = vunpack.i.h.bf16 %v3191_v12  ;;  %v1115_v5 = vsel %vm3906_vm4, %v1109_v15, 0.0  ;;  %vm1388_vm10 = vcmask 654336  }
 0x2a3   :  { %2205 = vrot.lane.b32.xlu0 %v2204_v30, %s2448_s30  ;;  %2225 = vrot.lane.b32.xlu1 %v2199_v1, %s2451_s13  ;;  %v1073_v23 = vsel %vm353_vm8, %v3942_v25, %v2157_v4  ;;  %vm3944_vm8 = vcmp.ge.s32.totalorder %v2962_v53, 2  ;;  %v482_v25 = vld [vmem:[%s3864_s2] sm:$0xff] }
 0x2a4   :  { %v1079_v13 = vsel %vm73_vm6, %v1073_v23, 0.0  ;;  %v1078_v12 = vsel %vm3944_vm8, %v3226_v7, 0.0  ;;  %vm3949_vm6 = vmmov %vm3948_vm12 }
 0x2a5   :  { %v2304_v59 = vpack.i.bf16 %v1079_v13, %v1078_v12  ;;  %v1743_v13 = vld [vmem:[%s3870_s8] sm:$0xff]  ;;  %v503_v12 = vld [vmem:[%s3865_s3 + $0x8] sm:$0xff]  ;;  %vm3951_vm8 = vmmov %vm3947_vm5  ;;  %s2478_s8 = smov [#allocation2]  }
 0x2a7   :  { %2220 = vrot.lane.b32.xlu0 %v3338_v51, %s2448_s30  ;;  %2230 = vrot.lane.b32.xlu1 %v3161_v3, %s2451_s13 }
 0x2ab   :  { %2240 = vrot.lane.b32.xlu0 %v3286_v34, %s2451_s13  ;;  %2235 = vrot.lane.b32.xlu1 %v2204_v30, %s2451_s13 }
 0x2af   :  { %2255 = vrot.lane.b32.xlu0 %v3261_v48, %s2451_s13  ;;  %2245 = vrot.lane.b32.xlu1 %v3197_v9, %s2451_s13 }
 0x2b3   :  { %2265 = vrot.lane.b32.xlu0 %v2264_v18, %s2476_s22  ;;  %2250 = vrot.lane.b32.xlu1 %v3338_v51, %s2451_s13  ;;  %v3943_v18 = vunpack.i.h.bf16 %v3219_v16 }
 0x2b5   :  { %v1091_v22 = vsel %vm1088_vm0, %v3943_v18, %v2172_v55  ;;  %v1114_v55 = vsel %vm3905_vm11, %v3376_v19, 0.0  ;;  %vm3950_vm0 = vmmov %vm3945_vm1 }
 0x2b6   :  { %v1097_v16 = vsel %vm3945_vm1, %v1091_v22, 0.0  ;;  %v2289_v43 = vpack.i.bf16 %v1115_v5, %v1114_v55  ;;  %v502_v22 = vld [vmem:[%s3865_s3] sm:$0xff]  ;;  %v155_v55 = vsel %vm3950_vm0, %v2949_v27, -inf  ;;  %vm3952_vm1 = vcmask 769024  }
 0x2b7   :  { %2270 = vrot.lane.b32.xlu0 %v2199_v1, %s2476_s22  ;;  %2260 = vrot.lane.b32.xlu1 %v2259_v50, %s2476_s22  ;;  %v2309_v42 = vpack.i.bf16 %v1097_v16, %v1096_v8  ;;  %v2088_v8 = vunpack.i.h.bf16 %v3125_v2  ;;  %v199_v27 = vmax.f32 %v155_v55, %v2980_v33  ;;  %v2112_v33 = vunpack.i.l.bf16 %v3217_v10 }
 0x2bb   :  { %2275 = vrot.lane.b32.xlu0 %v2204_v30, %s2476_s22  ;;  %2280 = vrot.lane.b32.xlu1 %v3293_v37, %s2448_s30 }
 0x2bf   :  { %2305 = vrot.lane.b32.xlu0 %v2304_v59, %s2448_s30  ;;  %2285 = vrot.lane.b32.xlu1 %v2304_v59, %s2471_s28 }
 0x2c3   :  { %2310 = vrot.lane.b32.xlu0 %v2309_v42, %s2448_s30  ;;  %2290 = vrot.lane.b32.xlu1 %v2289_v43, %s2448_s30 }
 0x2c7   :  { %2315 = vrot.lane.b32.xlu0 %v2289_v43, %s2451_s13  ;;  %2295 = vrot.lane.b32.xlu1 %v3197_v9, %s2476_s22 }
 0x2cb   :  { %2320 = vrot.lane.b32.xlu0 %v3293_v37, %s2451_s13  ;;  %2300 = vrot.lane.b32.xlu1 %v3261_v48, %s2476_s22  ;;  %v2108_v48 = vunpack.i.h.bf16 %v3152_v28 }
 0x2cf   :  { %2325 = vrot.lane.b32.xlu0 %v2309_v42, %s2451_s13  ;;  %2335 = vrot.lane.b32.xlu1 %v2199_v1, %s2471_s28 }
 0x2d3   :  { %2330 = vrot.lane.b32.xlu0 %v3338_v51, %s2476_s22  ;;  %2340 = vrot.lane.b32.xlu1 %v2304_v59, %s2451_s13 }
 0x2d7   :  { %2355 = vrot.lane.b32.xlu0 %v3286_v34, %s2471_s28  ;;  %2345 = vrot.lane.b32.xlu1 %v3161_v3, %s2471_s28 }
 0x2db   :  { %2380 = vrot.lane.b32.xlu0 %v3067_v36, %s2477_s29  ;;  %2350 = vrot.lane.b32.xlu1 %v2204_v30, %s2471_s28  ;;  %v2107_v36 = vunpack.i.l.bf16 %v3152_v28  ;;  %v3427_v30 = vld [vmem:[%s3869_s7] sm:$0xff] }
 0x2dd   :  { %v1390_v4 = vsel %vm1388_vm10, %v2107_v36, %v2108_v48 }
 0x2df   :  { %2390 = vrot.lane.b32.xlu0 %v2304_v59, %s2476_s22  ;;  %2360 = vrot.lane.b32.xlu1 %v3293_v37, %s2476_s22 }
 0x2e3   :  { %2395 = vrot.lane.b32.xlu0 %v2309_v42, %s2476_s22  ;;  %2365 = vrot.lane.b32.xlu1 %v2289_v43, %s2476_s22 }
 0x2e7   :  { %2400 = vrot.lane.b32.xlu0 %v2289_v43, %s2471_s28  ;;  %2370 = vrot.lane.b32.xlu1 %v3197_v9, %s2471_s28  ;;  %v1832_v9 = vcombine.high %v3427_v30, %v3427_v30 }
 0x2e9   :  { %v2186_v1 = vpop.permute.xlu0 %2185  ;;  %1852 = vmatprep.mubr.msk.bf16.mxu1 %vm3948_vm12, %v1832_v9  ;;  %1872 = vmatprep.mubr.msk.bf16.mxu0 %vm3949_vm6, %v1832_v9  ;;  %vm3955_vm12 = vmmov %vm3951_vm8 }
 0x2ea   :  { %v2188_v3 = vunpack.i.h.bf16 %v2186_v1  ;;  %v2187_v34 = vunpack.i.l.bf16 %v2186_v1  ;;  %v1753_v1 = vld [vmem:[%s3871_s9] sm:$0xff]  ;;  %vm3956_vm6 = vmmov %vm3951_vm8  ;;  %s1789_s9 = sshll.u32 %s2478_s8, 4  ;;  %s1790_s9 = int_to_ptr.vmem [resolvable:$true] %s1789_s9 }
 0x2eb   :  { %2405 = vrot.lane.b32.xlu0 %v3293_v37, %s2471_s28  ;;  %2375 = vrot.lane.b32.xlu1 %v3061_v56, %s2444_s27  ;;  %v2417_v56 = vld [vmem:[%s3862_s0 + $0x20] sm:$0xff]  ;;  %v2418_v37 = vld [vmem:[%s3862_s0 + $0x28] sm:$0xff]  ;;  %vm3957_vm0 = vmmov %vm3956_vm6  ;;  %p2425_p1 = scmp.lt.s32.totalorder %s1790_s9, %s1790_s9 }
 0x2ec   :  { %v1369_v28 = vsel %vm3947_vm5, %v2187_v34, %v2188_v3  ;;  %vm3954_vm5 = vmmov %vm3952_vm1 }
 0x2ed   :  { %v1616_v50 = vpack.c.bf16 %v1390_v4, %v1369_v28 }
 0x2ef   :  { %2410 = vrot.lane.b32.xlu0 %v2309_v42, %s2471_s28  ;;  %2385 = vrot.lane.b32.xlu1 %v3338_v51, %s2471_s28  ;;  %v2419_v51 = vld [vmem:[%s3862_s0 + $0x30] sm:$0xff]  ;;  %v2087_v42 = vunpack.i.l.bf16 %v3125_v2  ;;  %v176_v2 = vsel %vm3906_vm4, %v2951_v57, -inf }
 0x2f0   :  { %1661 = vmatprep.subr.bf16.mxu1 %v1616_v50  ;;  %v3508_v57 = vmax.f32 %v199_v27, %v176_v2 }
 0x2f3   :  { %1423 = vrot.lane.b32.xlu0 %v3007_v39, %s2444_s27  ;;  %1433 = vrot.lane.b32.xlu1 %v3037_v0, %s2477_s29  ;;  %v3454_v0 = vpop.permute.xlu1 %2175 }
 0x2f7   :  { %271 = vrot.lane.b32.xlu0 %v2417_v56, %s2459_s6  ;;  %273 = vrot.lane.b32.xlu1 %v2418_v37, %s2459_s6  ;;  %v3463_v23 = vpop.permute.xlu1 %2180 }
 0x2fb   :  { %275 = vrot.lane.b32.xlu0 %v2419_v51, %s2459_s6  ;;  %299 = vrot.lane.b32.xlu1 %v2417_v56, %s2461_s5 }
 0x2ff   :  { %301 = vrot.lane.b32.xlu0 %v2418_v37, %s2461_s5  ;;  %303 = vrot.lane.b32.xlu1 %v2419_v51, %s2461_s5 }
 0x303   :  { %285 = vrot.lane.b32.xlu0 %v2417_v56, %s2460_s24  ;;  %287 = vrot.lane.b32.xlu1 %v2418_v37, %s2460_s24 }
 0x307   :  { %289 = vrot.lane.b32.xlu0 %v2419_v51, %s2460_s24  ;;  %486 = vperm.xlu1 %2063, %v482_v25   ;;  %v2113_v51 = vunpack.i.h.bf16 %v3217_v10 }
 0x309   :  { %v3472_v15 = vpop.permute.xlu1 %2195 }
 0x30a   :  { %v2197_v18 = vunpack.i.l.bf16 %v3472_v15 }
 0x30b   :  { %491 = vperm.xlu0 %2062, %v483_v47   ;;  %1746 = vperm.xlu1 %2063, %v1743_v13  }
 0x30c   :  { %v1389_v43 = vsel %vm1388_vm10, %v2197_v18, %v2107_v36 }
 0x30d   :  { %v3481_v59 = vpop.permute.xlu0 %2190  ;;  %v2211_v5 = vpop.permute.xlu1 %2210 }
 0x30e   :  { %v2192_v16 = vunpack.i.l.bf16 %v3481_v59  ;;  %v2213_v56 = vunpack.i.h.bf16 %v2211_v5  ;;  %v2212_v36 = vunpack.i.l.bf16 %v2211_v5 }
 0x30f   :  { %506 = vperm.xlu0 %2062, %v502_v22   ;;  %511 = vperm.xlu1 %2063, %v503_v12   ;;  %v1327_v22 = vsel %vm3954_vm5, %v3113_v41, %v2087_v42  ;;  %v1288_v41 = vsel %vm3957_vm0, %v2112_v33, %v2113_v51 }
 0x310   :  { %v1368_v48 = vsel %vm3951_vm8, %v2192_v16, %v2187_v34  ;;  %v1328_v34 = vsel %vm3952_vm1, %v2087_v42, %v2088_v8  ;;  %v1308_v12 = vsel %vm3955_vm12, %v2212_v36, %v2213_v56  ;;  %vm3958_vm8 = vmmov %vm3957_vm0 }
 0x311   :  { %v1615_v3 = vpack.c.bf16 %v1389_v43, %v1368_v48  ;;  %v2201_v9 = vpop.permute.xlu0 %2200  ;;  %v3494_v28 = vpop.permute.xlu1 %2215  ;;  %vm3959_vm1 = vmmov %vm3957_vm0 }
 0x312   :  { %v2203_v4 = vunpack.i.h.bf16 %v2201_v9  ;;  %v2202_v50 = vunpack.i.l.bf16 %v2201_v9  ;;  %v2217_v5 = vunpack.i.l.bf16 %v3494_v28  ;;  %v1608_v9 = vpack.c.bf16 %v1308_v12, %v1288_v41 }
 0x313   :  { %1662 = vmatpush1.bf16.msra.mxu1 %v1615_v3  ;;  %1756 = vperm.xlu0 %2062, %v1753_v1  }
 0x314   :  { %221 = vrot.lane.b32.xlu1 %v2974_v11, %s2451_s13  ;;  %v1349_v37 = vsel %vm3953_vm14, %v2202_v50, %v2203_v4  ;;  %v1287_v27 = vsel %vm3958_vm8, %v2217_v5, %v2112_v33  ;;  %vm3960_vm14 = vcmask 916480   ;;  %v2093_v33 = vunpack.i.h.bf16 %v3189_v58 }
 0x315   :  { %v3506_v25 = vpop.permute.xlu0 %2205  ;;  %v2226_v47 = vpop.permute.xlu1 %2225  ;;  %v1612_v13 = vpack.c.bf16 %v1349_v37, %v1328_v34  ;;  %vm3961_vm5 = vmmov %vm3960_vm14  ;;  %vm3965_vm8 = vcmask 900096  }
 0x316   :  { %v2207_v18 = vunpack.i.l.bf16 %v3506_v25  ;;  %v2228_v16 = vunpack.i.h.bf16 %v2226_v47  ;;  %v2227_v55 = vunpack.i.l.bf16 %v2226_v47  ;;  %vm3962_vm12 = vmmov %vm3961_vm5 }
 0x317   :  { %1663 = vmatprep.subr.bf16.mxu1 %v1612_v13  ;;  %223 = vrot.lane.b32.xlu0 %v2986_v40, %s2451_s13  ;;  %vm3964_vm0 = vmmov %vm3961_vm5 }
 0x318   :  { %v1348_v10 = vsel %vm3956_vm6, %v2207_v18, %v2202_v50  ;;  %225 = vrot.lane.b32.xlu1 %v3508_v57, %s2451_s13  ;;  %v1239_v50 = vsel %vm3960_vm14, %v2227_v55, %v2228_v16  ;;  %vm3963_vm6 = vmmov %vm3961_vm5 }
 0x319   :  { %v1611_v8 = vpack.c.bf16 %v1348_v10, %v1327_v22  ;;  %v3520_v43 = vpop.permute.xlu0 %2220  ;;  %v2231_v48 = vpop.permute.xlu1 %2230  ;;  %vm3967_vm14 = vmmov %vm3964_vm0 }
 0x31a   :  { %v2222_v42 = vunpack.i.l.bf16 %v3520_v43  ;;  %v2233_v1 = vunpack.i.h.bf16 %v2231_v48  ;;  %v2232_v3 = vunpack.i.l.bf16 %v2231_v48 }
 0x31b   :  { %1664 = vmatpush1.bf16.msra.mxu1 %v1611_v8 }
 0x31c   :  { %v1307_v4 = vsel %vm3959_vm1, %v2222_v42, %v2212_v36  ;;  %1665 = vmatprep.subr.bf16.mxu1 %v1608_v9  ;;  %v1265_v2 = vsel %vm3961_vm5, %v2232_v3, %v2233_v1  ;;  %v2092_v36 = vunpack.i.l.bf16 %v3189_v58  ;;  %vm3966_vm1 = vmmov %vm3965_vm8  ;;  %vm3968_vm5 = vmmov 1  }
 0x31d   :  { %v1607_v56 = vpack.c.bf16 %v1307_v4, %v1287_v27  ;;  %v3528_v34 = vpop.permute.xlu0 %2240  ;;  %v3530_v37 = vpop.permute.xlu1 %2235  ;;  %v1604_v51 = vpack.c.bf16 %v1265_v2, %v1239_v50 }
 0x31e   :  { %v2242_v47 = vunpack.i.l.bf16 %v3528_v34  ;;  %v2237_v13 = vunpack.i.l.bf16 %v3530_v37  ;;  %v1215_v41 = vsel %vm3965_vm8, %v2092_v36, %v2093_v33  ;;  %v1214_v9 = vsel %vm3966_vm1, %v3115_v52, %v2092_v36 }
 0x31f   :  { %1666 = vmatpush1.bf16.msra.mxu1 %v1607_v56  ;;  %v3973_v36 = vpack.c.bf16 %v3182_v31, %v3148_v60  ;;  %vm1337_vm8 = vcmask 211968   ;;  %vm1490_vm1 = vcmask 523264   ;;  %v4014_v60 = vpack.c.bf16 %v3231_v38, %v3226_v7 }
 0x320   :  { %v1264_v18 = vsel %vm3962_vm12, %v2242_v47, %v2232_v3  ;;  %v1238_v22 = vsel %vm3963_vm6, %v2237_v13, %v2227_v55  ;;  %1667 = vmatprep.subr.bf16.mxu1 %v1604_v51  ;;  %vm3556_vm12 = vmpackc.low %vm3968_vm5, %vm81_vm9  ;;  %v3971_v51 = vunpack.i.l.bf16 %v3167_v26  ;;  %v2103_v13 = vunpack.i.h.bf16 %v3127_v24 }
 0x321   :  { %v1603_v12 = vpack.c.bf16 %v1264_v18, %v1238_v22  ;;  %v3538_v5 = vpop.permute.xlu0 %2255  ;;  %v2246_v10 = vpop.permute.xlu1 %2245  ;;  %vm3972_vm6 = vmmov %vm3964_vm0  ;;  %v4015_v38 = vpack.c.bf16 %v3320_v35, %v3244_v32 }
 0x322   :  { %v2248_v16 = vunpack.i.h.bf16 %v2246_v10  ;;  %v2247_v8 = vunpack.i.l.bf16 %v2246_v10  ;;  %v2257_v3 = vunpack.i.l.bf16 %v3538_v5  ;;  %vm3572_vm9 = vmpackc.low %vm3968_vm5, %vm80_vm13  ;;  %v1846_v10 = vpack.c.bf16 %v3177_v14, %v3050_v44 }
 0x323   :  { %1668 = vmatpush1.bf16.msra.mxu1 %v1603_v12  ;;  %vm3979_vm13 = vcmask 506880   ;;  %v1849_v14 = vpack.c.bf16 %v3317_v6, %v3007_v39  ;;  %v2208_v39 = vunpack.i.h.bf16 %v3506_v25 }
 0x324   :  { %v1192_v48 = vsel %vm3964_vm0, %v2247_v8, %v2248_v16  ;;  %v1165_v47 = vsel %vm3972_vm6, %v2257_v3, %v3971_v51  ;;  %vm3582_vm0 = vmpackc.low %vm3905_vm11, %vm3968_vm5  ;;  %vm3983_vm6 = vcmp.ge.s32.totalorder %v2962_v53, 2 }
 0x325   :  { %v3542_v42 = vpop.permute.xlu0 %2265  ;;  %v3544_v1 = vpop.permute.xlu1 %2250  ;;  %v1600_v58 = vpack.c.bf16 %v1215_v41, %v1192_v48  ;;  %v1837_v26 = vpack.c.bf16 %v1165_v47, %v3259_v63  ;;  %v3987_v47 = vpack.c.bf16 %v3199_v49, %v3203_v61 }
 0x326   :  { %v2252_v55 = vunpack.i.l.bf16 %v3544_v1  ;;  %v2267_v31 = vunpack.i.l.bf16 %v3542_v42 }
 0x327   :  { %1669 = vmatprep.subr.bf16.mxu1 %v1600_v58 }
 0x328   :  { %v1191_v27 = vsel %vm3967_vm14, %v2252_v55, %v2247_v8  ;;  %v3978_v8 = vunpack.i.l.bf16 %v3127_v24  ;;  %v3980_v55 = vpack.c.bf16 %v3201_v29, %v3205_v20  ;;  %vm3607_vm14 = vmpackc.low %vm3907_vm3, %vm3968_vm5  ;;  %v2198_v20 = vunpack.i.h.bf16 %v3472_v15 }
 0x329   :  { %v1599_v4 = vpack.c.bf16 %v1214_v9, %v1191_v27  ;;  %v3551_v50 = vpop.permute.xlu0 %2270  ;;  %v2261_v2 = vpop.permute.xlu1 %2260  ;;  %v2143_v9 = vunpack.i.h.bf16 %v3235_v54  ;;  %v2142_v27 = vunpack.i.l.bf16 %v3235_v54  ;;  %vm3984_vm5 = vcmp.ge.s32.totalorder %v2962_v53, 1 }
 0x32a   :  { %v2263_v52 = vunpack.i.h.bf16 %v2261_v2  ;;  %v2262_v33 = vunpack.i.l.bf16 %v2261_v2  ;;  %v2273_v16 = vunpack.i.h.bf16 %v3551_v50  ;;  %v2272_v63 = vunpack.i.l.bf16 %v3551_v50 }
 0x32b   :  { %1670 = vmatpush1.bf16.msra.mxu1 %v1599_v4  ;;  %v3596_v48 = vsel %vm3979_vm13, %v3978_v8, %v2103_v13  ;;  %vm3623_vm13 = vmpackc.low %vm3984_vm5, %vm3983_vm6  ;;  %v2193_v2 = vunpack.i.h.bf16 %v3481_v59  ;;  %vm3988_vm6 = vcmask 785408  }
 0x32c   :  { %1835 = vmatprep.subr.msk.bf16.mxu1 %vm3556_vm12, %v3973_v36  ;;  %v1574_v41 = vsel %vm1490_vm1, %v2263_v52, %v2267_v31  ;;  %v1573_v24 = vsel %vm1490_vm1, %v2262_v33, %v2263_v52  ;;  %v1554_v52 = vsel %vm1490_vm1, %v2272_v63, %v2273_v16  ;;  %vm3644_vm5 = vmpackc.low %vm74_vm2, %vm71_vm15  ;;  %vm3993_vm15 = vcmask 1043456  }
 0x32d   :  { %v3577_v22 = vpop.permute.xlu0 %2275  ;;  %v2281_v12 = vpop.permute.xlu1 %2280  ;;  %v1636_v54 = vpack.c.bf16 %v1574_v41, %v1574_v41  ;;  %v1635_v13 = vpack.c.bf16 %v1573_v24, %v1573_v24  ;;  %vm3991_vm11 = vmmov %vm3988_vm6 }
 0x32e   :  { %v2283_v58 = vunpack.i.h.bf16 %v2281_v12  ;;  %v2282_v3 = vunpack.i.l.bf16 %v2281_v12  ;;  %v2277_v15 = vunpack.i.l.bf16 %v3577_v22  ;;  %vm3994_vm4 = vmmov %vm3993_vm15 }
 0x32f   :  { %1838 = vmatpush1.bf16.msk.msra.mxu1 %vm3572_vm9, %v1837_v26  ;;  %vm3995_vm3 = vmmov %vm3988_vm6 }
 0x330   :  { %1841 = vmatprep.subr.msk.bf16.mxu1 %vm3582_vm0, %v3980_v55  ;;  %v1378_v33 = vsel %vm3988_vm6, %v2193_v2, %v2282_v3  ;;  %v1379_v49 = vsel %vm3991_vm11, %v2282_v3, %v2283_v58  ;;  %v2177_v58 = vunpack.i.l.bf16 %v3454_v0  ;;  %v1339_v3 = vsel %vm1337_vm8, %v2142_v27, %v2143_v9  ;;  %vm3992_vm11 = vmmov %vm3988_vm6 }
 0x331   :  { %v3617_v29 = vpop.permute.xlu0 %2305  ;;  %v2286_v4 = vpop.permute.xlu1 %2285 }
 0x332   :  { %v2288_v6 = vunpack.i.h.bf16 %v2286_v4  ;;  %v2287_v51 = vunpack.i.l.bf16 %v2286_v4  ;;  %v2308_v36 = vunpack.i.h.bf16 %v3617_v29  ;;  %v2307_v26 = vunpack.i.l.bf16 %v3617_v29 }
 0x333   :  { %1844 = vmatpush1.bf16.msk.msra.mxu1 %vm3607_vm14, %v3987_v47  ;;  %v2178_v4 = vunpack.i.h.bf16 %v3454_v0  ;;  %v2223_v29 = vunpack.i.h.bf16 %v3520_v43  ;;  %v1553_v43 = vsel %vm1490_vm1, %v2277_v15, %v2272_v63 }
 0x334   :  { %v1399_v59 = vsel %vm1388_vm10, %v2198_v20, %v2287_v51  ;;  %1847 = vmatprep.subr.msk.bf16.mxu1 %vm3623_vm13, %v1846_v10  ;;  %v1400_v61 = vsel %vm1388_vm10, %v2287_v51, %v2288_v6  ;;  %v1338_v20 = vsel %vm1337_vm8, %v3119_v21, %v2142_v27  ;;  %v1632_v21 = vpack.c.bf16 %v1554_v52, %v3596_v48  ;;  %vm3996_vm8 = vmmov %vm3995_vm3 }
 0x335   :  { %v1617_v12 = vpack.c.bf16 %v1399_v59, %v1378_v33  ;;  %v2311_v31 = vpop.permute.xlu0 %2310  ;;  %v2291_v16 = vpop.permute.xlu1 %2290  ;;  %v1618_v10 = vpack.c.bf16 %v1400_v61, %v1379_v49  ;;  %v2218_v49 = vunpack.i.h.bf16 %v3494_v28  ;;  %v1492_v63 = vsel %vm1490_vm1, %v2177_v58, %v2178_v4  ;;  %v3998_v28 = vld [vmem:[#allocation18_spill] sm:$0xff]  ;;  %v3999_v4 = vld [vmem:[#allocation20_spill] sm:$0xff] }
 0x336   :  { %v2313_v8 = vunpack.i.h.bf16 %v2311_v31  ;;  %v2312_v41 = vunpack.i.l.bf16 %v2311_v31  ;;  %v2293_v55 = vunpack.i.h.bf16 %v2291_v16  ;;  %v2292_v24 = vunpack.i.l.bf16 %v2291_v16 }
 0x337   :  { %1850 = vmatpush1.bf16.msk.msra.mxu1 %vm3644_vm5, %v1849_v14  ;;  %1702 = vmatprep.subr.bf16.mxu0 %v1618_v10  ;;  %v1650_v14 = vsel %vm3994_vm4, %v1635_v13, 0  ;;  %v1297_v31 = vsel %vm3995_vm3, %v2218_v49, %v2307_v26  ;;  %vm4000_vm4 = vcmask 916480   ;;  %v4005_v49 = vld [vmem:[#allocation17_spill] sm:$0xff] }
 0x338   :  { %v1358_v2 = vsel %vm3992_vm11, %v2208_v39, %v2292_v24  ;;  %1851 = vmatprep.subr.msk.bf16.mxu1 %vm3993_vm15, %v1636_v54  ;;  %1703 = vmatpush1.bf16.msra.mxu0 %v1617_v12  ;;  %v1359_v6 = vsel %vm3988_vm6, %v2292_v24, %v2293_v55  ;;  %v1318_v9 = vsel %vm3995_vm3, %v2312_v41, %v2313_v8  ;;  %vm3997_vm11 = vmmov %vm3995_vm3 }
 0x339   :  { %v1613_v51 = vpack.c.bf16 %v1358_v2, %v1338_v20  ;;  %v2316_v47 = vpop.permute.xlu0 %2315  ;;  %v3664_v33 = vpop.permute.xlu1 %2295  ;;  %v1614_v59 = vpack.c.bf16 %v1359_v6, %v1339_v3  ;;  %v1298_v54 = vsel %vm3996_vm8, %v2307_v26, %v2308_v36  ;;  %v1317_v48 = vsel %vm3997_vm11, %v2223_v29, %v2312_v41  ;;  %vm4001_vm15 = vmmov %vm4000_vm4 }
 0x33a   :  { %v2298_v27 = vunpack.i.h.bf16 %v3664_v33  ;;  %v2297_v39 = vunpack.i.l.bf16 %v3664_v33  ;;  %v2317_v52 = vunpack.i.l.bf16 %v2316_v47  ;;  %v1610_v61 = vpack.c.bf16 %v1318_v9, %v1298_v54  ;;  %vm4002_vm6 = vmmov %vm4000_vm4 }
 0x33b   :  { %1684 = vmatpush2.bf16.msra.mxu1 %v1650_v14  ;;  %1704 = vmatprep.subr.bf16.mxu0 %v1614_v59  ;;  %v2318_v13 = vunpack.i.h.bf16 %v2316_v47  ;;  %v2238_v36 = vunpack.i.h.bf16 %v3530_v37  ;;  %v1631_v12 = vpack.c.bf16 %v1553_v43, %v3998_v28  ;;  %v2243_v41 = vunpack.i.h.bf16 %v3528_v34  ;;  %vm4003_vm8 = vmmov %vm4000_vm4  ;;  %v4004_v43 = vld [vmem:[#allocation21_spill] sm:$0xff] }
 0x33c   :  { %1685 = vmatprep.subr.bf16.mxu1 %v1632_v21  ;;  %1705 = vmatpush1.bf16.msra.mxu0 %v1613_v51  ;;  %v1512_v15 = vsel %vm1490_vm1, %v2297_v39, %v2298_v27  ;;  %v1609_v55 = vpack.c.bf16 %v1317_v48, %v1297_v31  ;;  %v2148_v3 = vunpack.i.h.bf16 %v3999_v4  ;;  %v2147_v37 = vunpack.i.l.bf16 %v3999_v4  ;;  %vm4006_vm3 = vmmov %vm4000_vm4 }
 0x33d   :  { %v2321_v16 = vpop.permute.xlu0 %2320  ;;  %v3683_v10 = vpop.permute.xlu1 %2300  ;;  %1706 = vmatprep.subr.bf16.mxu0 %v1610_v61  ;;  %v1628_v8 = vpack.c.bf16 %v1512_v15, %v1492_v63  ;;  %v1251_v29 = vsel %vm4000_vm4, %v2238_v36, %v2317_v52  ;;  %v1252_v26 = vsel %vm4002_vm6, %v2317_v52, %v2318_v13  ;;  %vm1224_vm11 = vcmask 343040   ;;  %vm4007_vm4 = vmmov %vm4006_vm3 }
 0x33e   :  { %v2323_v24 = vunpack.i.h.bf16 %v2321_v16  ;;  %v2322_v20 = vunpack.i.l.bf16 %v2321_v16  ;;  %v2253_v14 = vunpack.i.h.bf16 %v3544_v1  ;;  %v2153_v27 = vunpack.i.h.bf16 %v4004_v43  ;;  %vm4010_vm6 = vmmov %vm4006_vm3 }
 0x33f   :  { %1686 = vmatpush2.bf16.msra.mxu1 %v1631_v12  ;;  %v2302_v54 = vunpack.i.l.bf16 %v3683_v10  ;;  %v1225_v48 = vsel %vm1224_vm11, %v4005_v49, %v2147_v37  ;;  %v1226_v13 = vsel %vm1224_vm11, %v2147_v37, %v2148_v3  ;;  %v2258_v28 = vunpack.i.h.bf16 %v3538_v5  ;;  %v4011_v37 = vld [vmem:[#allocation22_spill] sm:$0xff] }
 0x340   :  { %v1277_v2 = vsel %vm4001_vm15, %v2243_v41, %v2322_v20  ;;  %1687 = vmatprep.subr.bf16.mxu1 %v1628_v8  ;;  %1707 = vmatpush1.bf16.msra.mxu0 %v1609_v55  ;;  %v1278_v6 = vsel %vm4003_vm8, %v2322_v20, %v2323_v24  ;;  %v4008_v8 = vunpack.i.l.bf16 %v4004_v43  ;;  %vm4009_vm15 = vmmov %vm4006_vm3  ;;  %v4013_v43 = vpack.c.bf16 %v3302_v45, %v3299_v62 }
 0x341   :  { %v1605_v34 = vpack.c.bf16 %v1277_v2, %v1251_v29  ;;  %v2326_v21 = vpop.permute.xlu0 %2325  ;;  %v2336_v51 = vpop.permute.xlu1 %2335  ;;  %v1606_v47 = vpack.c.bf16 %v1278_v6, %v1252_v26  ;;  %v1491_v55 = vsel %vm1490_vm1, %v2302_v54, %v2177_v58  ;;  %v4012_v26 = vld [vmem:[#allocation23_spill] sm:$0xff]  ;;  %v2182_v45 = vunpack.i.l.bf16 %v3463_v23 }
 0x342   :  { %v2328_v59 = vunpack.i.h.bf16 %v2326_v21  ;;  %v2327_v9 = vunpack.i.l.bf16 %v2326_v21  ;;  %v1153_v41 = vsel %vm1151_vm7, %v4008_v8, %v2153_v27  ;;  %v2338_v24 = vunpack.i.h.bf16 %v2336_v51 }
 0x343   :  { %1708 = vmatprep.subr.bf16.mxu0 %v1606_v47  ;;  %v2337_v20 = vunpack.i.l.bf16 %v2336_v51  ;;  %v1860_v51 = vpack.c.bf16 %v3376_v19, %v1153_v41  ;;  %vm1542_vm7 = vcmask 998400   ;;  %v2278_v62 = vunpack.i.h.bf16 %v3577_v22 }
 0x344   :  { %v1204_v52 = vsel %vm4006_vm3, %v2253_v14, %v2327_v9  ;;  %1709 = vmatpush1.bf16.msra.mxu0 %v1605_v34  ;;  %v1205_v61 = vsel %vm4007_vm4, %v2327_v9, %v2328_v59  ;;  %vm4024_vm8 = vcmp.ge.s32.totalorder %v3057_v46, 1  ;;  %vm4025_vm11 = vcmp.ge.s32.totalorder %v2962_v53, 1 }
 0x345   :  { %v1601_v63 = vpack.c.bf16 %v1225_v48, %v1204_v52  ;;  %v3698_v15 = vpop.permute.xlu0 %2330  ;;  %v2341_v36 = vpop.permute.xlu1 %2340  ;;  %v1602_v1 = vpack.c.bf16 %v1226_v13, %v1205_v61  ;;  %v2268_v48 = vunpack.i.h.bf16 %v3542_v42  ;;  %v2183_v13 = vunpack.i.h.bf16 %v3463_v23 }
 0x346   :  { %v2332_v12 = vunpack.i.l.bf16 %v3698_v15  ;;  %v2343_v31 = vunpack.i.h.bf16 %v2341_v36  ;;  %v2342_v16 = vunpack.i.l.bf16 %v2341_v36  ;;  %v2333_v25 = vunpack.i.h.bf16 %v3698_v15 }
 0x347   :  { %1710 = vmatprep.subr.bf16.mxu0 %v1602_v1  ;;  %v1544_v35 = vsel %vm1542_vm7, %v2182_v45, %v2183_v13  ;;  %vm4027_vm4 = vcmask 613376  }
 0x348   :  { %v1511_v4 = vsel %vm1490_vm1, %v2332_v12, %v2297_v39  ;;  %v1178_v5 = vsel %vm4009_vm15, %v2258_v28, %v2342_v16  ;;  %v1179_v3 = vsel %vm4010_vm6, %v2342_v16, %v2343_v31  ;;  %1711 = vmatpush1.bf16.msra.mxu0 %v1601_v63  ;;  %v1451_v39 = vsel %vm1388_vm10, %v2337_v20, %v2338_v24  ;;  %v4016_v16 = vld [vmem:[#allocation19_spill] sm:$0xff]  ;;  %vm4029_vm15 = vmmov %vm4027_vm4 }
 0x349   :  { %v1627_v29 = vpack.c.bf16 %v1511_v4, %v1491_v55  ;;  %v1854_v2 = vpack.c.bf16 %v1179_v3, %v4011_v37  ;;  %v1857_v6 = vpack.c.bf16 %v1178_v5, %v4012_v26  ;;  %v3715_v0 = vpop.permute.xlu0 %2355  ;;  %v2346_v58 = vpop.permute.xlu1 %2345  ;;  %v1543_v8 = vsel %vm1542_vm7, %v4016_v16, %v2182_v45 }
 0x34a   :  { %v2348_v34 = vunpack.i.h.bf16 %v2346_v58  ;;  %v2347_v21 = vunpack.i.l.bf16 %v2346_v58  ;;  %v2357_v33 = vunpack.i.l.bf16 %v3715_v0  ;;  %vm4030_vm6 = vcmp.le.s32.totalorder %v3057_v46, 14 }
 0x34b   :  { %1688 = vmatpush2.bf16.msra.mxu1 %v1627_v29  ;;  %1855 = vmatprep.subr.msk.bf16.mxu0 %vm3556_vm12, %v1854_v2  ;;  %vm4017_vm12 = vcmask 1043456   ;;  %v2303_v29 = vunpack.i.h.bf16 %v3683_v10  ;;  %vm4031_vm7 = vcmp.le.s32.totalorder %v2962_v53, 14 }
 0x34c   :  { %1858 = vmatpush1.bf16.msk.msra.mxu0 %vm3572_vm9, %v1857_v6  ;;  %v1471_v47 = vsel %vm1388_vm10, %v2347_v21, %v2348_v34  ;;  %v1470_v9 = vsel %vm1388_vm10, %v2357_v33, %v2347_v21  ;;  %vm4018_vm9 = vmmov %vm4017_vm12 }
 0x34d   :  { %v3725_v14 = vpop.permute.xlu0 %2380  ;;  %v3727_v59 = vpop.permute.xlu1 %2350  ;;  %1861 = vmatprep.subr.msk.bf16.mxu0 %vm3582_vm0, %v1860_v51  ;;  %v1624_v19 = vpack.c.bf16 %v1471_v47, %v1451_v39  ;;  %v2358_v51 = vunpack.i.h.bf16 %v3715_v0  ;;  %vm4019_vm0 = vcmask 637952  }
 0x34e   :  { %v2352_v56 = vunpack.i.l.bf16 %v3727_v59  ;;  %v2353_v33 = vunpack.i.h.bf16 %v3727_v59 }
 0x34f   :  { %1689 = vmatprep.subr.bf16.mxu1 %v1624_v19 }
 0x350   :  { %v1450_v18 = vsel %vm1388_vm10, %v2352_v56, %v2337_v20  ;;  %1864 = vmatpush1.bf16.msk.msra.mxu0 %vm3607_vm14, %v4013_v43  ;;  %v2383_v43 = vunpack.i.h.bf16 %v3725_v14  ;;  %vm4020_vm14 = vmmov %vm4019_vm0 }
 0x351   :  { %v1623_v27 = vpack.c.bf16 %v1470_v9, %v1450_v18  ;;  %v2391_v54 = vpop.permute.xlu0 %2390  ;;  %v2361_v49 = vpop.permute.xlu1 %2360  ;;  %1867 = vmatprep.subr.msk.bf16.mxu0 %vm3623_vm13, %v4014_v60  ;;  %vm4021_vm13 = vcmask 629760  }
 0x352   :  { %v2363_v52 = vunpack.i.h.bf16 %v2361_v49  ;;  %v2362_v61 = vunpack.i.l.bf16 %v2361_v49  ;;  %v2393_v42 = vunpack.i.h.bf16 %v2391_v54  ;;  %v2392_v50 = vunpack.i.l.bf16 %v2391_v54 }
 0x353   :  { %1690 = vmatpush2.bf16.msra.mxu1 %v1623_v27  ;;  %v2382_v27 = vunpack.i.l.bf16 %v3725_v14 }
 0x354   :  { %v1584_v44 = vsel %vm1490_vm1, %v2362_v61, %v2363_v52  ;;  %1870 = vmatpush1.bf16.msk.msra.mxu0 %vm3644_vm5, %v4015_v38  ;;  %v1583_v7 = vsel %vm1490_vm1, %v2268_v48, %v2362_v61  ;;  %v1502_v2 = vsel %vm1490_vm1, %v2392_v50, %v2393_v42  ;;  %v1501_v34 = vsel %vm1490_vm1, %v2303_v29, %v2392_v50 }
 0x355   :  { %v1638_v63 = vpack.c.bf16 %v1584_v44, %v1584_v44  ;;  %v2396_v36 = vpop.permute.xlu0 %2395  ;;  %v2366_v1 = vpop.permute.xlu1 %2365  ;;  %v1637_v23 = vpack.c.bf16 %v1583_v7, %v1583_v7  ;;  %vm4023_vm5 = vcmask 621568  }
 0x356   :  { %v2398_v28 = vunpack.i.h.bf16 %v2396_v36  ;;  %v2397_v12 = vunpack.i.l.bf16 %v2396_v36  ;;  %v2368_v31 = vunpack.i.h.bf16 %v2366_v1  ;;  %v2367_v22 = vunpack.i.l.bf16 %v2366_v1  ;;  %vm4026_vm3 = vmmov %vm4023_vm5 }
 0x357   :  { %1871 = vmatprep.subr.msk.bf16.mxu0 %vm4017_vm12, %v1638_v63  ;;  %v1656_v32 = vsel %vm4018_vm9, %v1637_v23, 0  ;;  %vm4041_vm9 = vcmask 916480  }
 0x358   :  { %v1563_v41 = vsel %vm1490_vm1, %v2278_v62, %v2367_v22  ;;  %1725 = vmatpush2.bf16.msra.mxu0 %v1656_v32  ;;  %v1564_v55 = vsel %vm1490_vm1, %v2367_v22, %v2368_v31  ;;  %v1522_v24 = vsel %vm1490_vm1, %v2397_v12, %v2398_v28  ;;  %v1521_v37 = vsel %vm1490_vm1, %v2333_v25, %v2397_v12 }
 0x359   :  { %v1633_v20 = vpack.c.bf16 %v1563_v41, %v1543_v8  ;;  %v2401_v4 = vpop.permute.xlu0 %2400  ;;  %v2371_v5 = vpop.permute.xlu1 %2370  ;;  %v1634_v3 = vpack.c.bf16 %v1564_v55, %v1544_v35  ;;  %v1630_v58 = vpack.c.bf16 %v1522_v24, %v1502_v2  ;;  %v1629_v39 = vpack.c.bf16 %v1521_v37, %v1501_v34 }
 0x35a   :  { %v2402_v26 = vunpack.i.l.bf16 %v2401_v4  ;;  %v2373_v6 = vunpack.i.h.bf16 %v2371_v5  ;;  %v2372_v15 = vunpack.i.l.bf16 %v2371_v5  ;;  %v2403_v21 = vunpack.i.h.bf16 %v2401_v4 }
 0x35b   :  { %1726 = vmatprep.subr.bf16.mxu0 %v1634_v3  ;;  %vm1439_vm1 = vcmask 80896   ;;  %v1831_v8 = vcombine.low %v3427_v30, %v3427_v30 }
 0x35c   :  { %1727 = vmatpush2.bf16.msra.mxu0 %v1633_v20  ;;  %v1460_v54 = vsel %vm1388_vm10, %v2353_v33, %v2402_v26  ;;  %v1410_v49 = vsel %vm1388_vm10, %v2372_v15, %v2373_v6  ;;  %v1461_v60 = vsel %vm1388_vm10, %v2402_v26, %v2403_v21  ;;  %v1441_v50 = vsel %vm1439_vm1, %v2382_v27, %v2383_v43  ;;  %v4033_v43 = vld [vmem:[#allocation8_spill] sm:$0xff] }
 0x35d   :  { %v2406_v47 = vpop.permute.xlu0 %2405  ;;  %v2376_v10 = vpop.permute.xlu1 %2375  ;;  %1728 = vmatprep.subr.bf16.mxu0 %v1630_v58 }
 0x35e   :  { %v2408_v19 = vunpack.i.h.bf16 %v2406_v47  ;;  %v2407_v56 = vunpack.i.l.bf16 %v2406_v47  ;;  %v2378_v9 = vunpack.i.h.bf16 %v2376_v10  ;;  %v2377_v18 = vunpack.i.l.bf16 %v2376_v10 }
 0x360   :  { %v1480_v0 = vsel %vm1388_vm10, %v2358_v51, %v2407_v56  ;;  %1729 = vmatpush2.bf16.msra.mxu0 %v1629_v39  ;;  %v1430_v59 = vsel %vm4019_vm0, %v2377_v18, %v2378_v9  ;;  %v1481_v48 = vsel %vm1388_vm10, %v2407_v56, %v2408_v19  ;;  %v4032_v9 = vld [vmem:[#allocation7_spill] sm:$0xff]  ;;  %vm4044_vm0 = vcmask 785408  }
 0x361   :  { %v1625_v52 = vpack.c.bf16 %v1480_v0, %v1460_v54  ;;  %v2411_v61 = vpop.permute.xlu0 %2410  ;;  %v2386_v13 = vpop.permute.xlu1 %2385  ;;  %v1620_v45 = vpack.c.bf16 %v1430_v59, %v1410_v49  ;;  %v1626_v62 = vpack.c.bf16 %v1481_v48, %v1461_v60  ;;  %v4034_v54 = vld [vmem:[#allocation11_spill] sm:$0xff]  ;;  %v4035_v0 = vld [vmem:[#allocation12_spill] sm:$0xff]  ;;  %v4036_v59 = vld [vmem:[#allocation9_spill] sm:$0xff] }
 0x362   :  { %v2413_v14 = vunpack.i.h.bf16 %v2411_v61  ;;  %v2412_v44 = vunpack.i.l.bf16 %v2411_v61  ;;  %v2388_v38 = vunpack.i.h.bf16 %v2386_v13  ;;  %v2387_v7 = vunpack.i.l.bf16 %v2386_v13  ;;  %v4037_v48 = vld [vmem:[#allocation10_spill] sm:$0xff]  ;;  %v4038_v61 = vld [vmem:[#allocation13_spill] sm:$0xff] }
 0x363   :  { %1691 = vmatprep.subr.bf16.mxu1 %v1620_v45  ;;  %1730 = vmatprep.subr.bf16.mxu0 %v1626_v62  ;;  %v4039_v45 = vld [vmem:[#allocation14_spill] sm:$0xff] }
 0x364   :  { %1731 = vmatpush2.bf16.msra.mxu0 %v1625_v52  ;;  %v1420_v42 = vsel %vm1388_vm10, %v2412_v44, %v2413_v14  ;;  %v1409_v23 = vsel %vm1388_vm10, %v2387_v7, %v2372_v15  ;;  %v1419_v12 = vsel %vm1388_vm10, %v2388_v38, %v2412_v44  ;;  %vm4022_vm10 = vmmov %vm4021_vm13 }
 0x365   :  { %v1424_v63 = vpop.permute.xlu0 %1423  ;;  %v1434_v36 = vpop.permute.xlu1 %1433  ;;  %v1622_v1 = vpack.c.bf16 %v1441_v50, %v1420_v42 }
 0x366   :  { %v1429_v28 = vsel %vm4020_vm14, %v1424_v63, %v2377_v18  ;;  %v1440_v31 = vsel %vm1439_vm1, %v1434_v36, %v2382_v27  ;;  %vm4045_vm1 = vmmov %vm4041_vm9 }
 0x367   :  { %v1619_v22 = vpack.c.bf16 %v1429_v28, %v1409_v23  ;;  %v1621_v16 = vpack.c.bf16 %v1440_v31, %v1419_v12  ;;  %1732 = vmatprep.subr.bf16.mxu0 %v1622_v1 }
 0x369   :  { %v272_v32 = vpop.permute.xlu0 %271  ;;  %v274_v35 = vpop.permute.xlu1 %273  ;;  %1692 = vmatpush2.bf16.msra.mxu1 %v1619_v22  ;;  %1733 = vmatpush2.bf16.msra.mxu0 %v1621_v16 }
 0x36a   :  { %v277_v55 = vsel %vm4021_vm13, %v272_v32, %v274_v35  ;;  %vm4047_vm13 = vmmov %vm4045_vm1 }
 0x36b   :  { %v282_v24 = vsel %vm74_vm2, %v277_v55, -inf  ;;  %vm4028_vm2 = vcmp.le.s32.totalorder %v2954_v17, 14 }
 0x36c   :  { %1694 = vmatmul.mubr.bf16.vlgmr.msra.gmra.mxu1 %v1831_v8  ;;  %1735 = vmatmul.mubr.bf16.vlgmr.msra.gmra.mxu0 %v1831_v8 }
 0x36d   :  { %v276_v25 = vpop.permute.xlu0 %275  ;;  %v300_v41 = vpop.permute.xlu1 %299 }
 0x36e   :  { %v278_v5 = vsel %vm4022_vm10, %v274_v35, %v276_v25  ;;  %v284_v30 = vsel %vm4024_vm8, %v276_v25, -inf  ;;  %vm4048_vm10 = vmmov %vm4044_vm0 }
 0x36f   :  { %v283_v37 = vsel %vm4025_vm11, %v278_v5, -inf  ;;  %vm4050_vm8 = vmmov %vm4044_vm0 }
 0x370   :  { %vm4051_vm11 = vmmov %vm4044_vm0 }
 0x371   :  { %v302_v20 = vpop.permute.xlu0 %301  ;;  %v304_v4 = vpop.permute.xlu1 %303 }
 0x372   :  { %v305_v3 = vsel %vm4023_vm5, %v300_v41, %v302_v20  ;;  %v306_v2 = vsel %vm4026_vm3, %v302_v20, %v304_v4  ;;  %v316_v58 = vmax.f32 %v284_v30, %v304_v4  ;;  %v4040_v41 = vld [vmem:[#allocation5_spill] sm:$0xff]  ;;  %v4043_v30 = vld [vmem:[#allocation15_spill] sm:$0xff]  ;;  %vm4049_vm5 = vmmov %vm4045_vm1 }
 0x373   :  { %v309_v29 = vmax.f32 %v282_v24, %v305_v3  ;;  %v310_v21 = vmax.f32 %v283_v37, %v306_v2  ;;  %vm83_vm12 = vcmp.ge.s32.totalorder %v4040_v41, 16  ;;  %v4042_v3 = vld [vmem:[#allocation16_spill] sm:$0xff] }
 0x374   :  { %v196_v20 = vsel %vm83_vm12, %v2974_v11, -inf }
 0x375   :  { %v286_v26 = vpop.permute.xlu0 %285  ;;  %v288_v6 = vpop.permute.xlu1 %287 }
 0x376   :  { %v291_v15 = vsel %vm4027_vm4, %v286_v26, %v288_v6 }
 0x377   :  { %v296_v34 = vsel %vm4028_vm2, %v291_v15, -inf }
 0x378   :  { %v3799_v51 = vmax.f32 %v309_v29, %v296_v34  ;;  %v215_v29 = vsel %vm4044_vm0, %v4043_v30, %v4042_v3  ;;  %v4046_v34 = vld [vmem:[#allocation6_spill] sm:$0xff] }
 0x379   :  { %v290_v33 = vpop.permute.xlu0 %289  ;;  %vm86_vm14 = vcmp.lt.s32.totalorder %v4046_v34, 240 }
 0x37a   :  { %v292_v39 = vsel %vm4029_vm15, %v288_v6, %v290_v33  ;;  %v298_v47 = vsel %vm4030_vm6, %v290_v33, -inf  ;;  %333 = vrot.lane.b32.xlu0 %v3799_v51, %s2451_s13 }
 0x37b   :  { %v297_v10 = vsel %vm4031_vm7, %v292_v39, -inf  ;;  %v317_v19 = vmax.f32 %v316_v58, %v298_v47 }
 0x37c   :  { %v3808_v56 = vmax.f32 %v310_v21, %v297_v10 }
 0x37e   :  { %335 = vrot.lane.b32.xlu1 %v3808_v56, %s2451_s13  ;;  %337 = vrot.lane.b32.xlu0 %v317_v19, %s2451_s13 }
 0x382   :  { %212 = vrot.lane.b32.xlu1 %v3508_v57, %s2448_s30  ;;  %323 = vrot.lane.b32.xlu0 %v3808_v56, %s2448_s30  ;;  %v487_v17 = vpop.permute.xlu1 %486 }
 0x383   :  { %v494_v18 = vmul.f32 %v487_v17, %v4032_v9  ;;  %v495_v27 = vmul.f32 %v487_v17, %v4033_v43  ;;  %v496_v49 = vmul.f32 %v487_v17, %v4034_v54  ;;  %v497_v57 = vmul.f32 %v487_v17, %v4035_v0 }
 0x384   :  { %v313_v17 = vsel %vm83_vm12, %v3799_v51, -inf }
 0x386   :  { %v492_v46 = vpop.permute.xlu0 %491  ;;  %325 = vrot.lane.b32.xlu1 %v317_v19, %s2448_s30  ;;  %321 = vrot.lane.b32.xlu0 %v3799_v51, %s2448_s30  ;;  %v3820_v53 = vpop.permute.xlu1 %1746  ;;  %s2420_s30 = scalar_lea.vmem %s1790_s9, 2048 }
 0x387   :  { %v498_v60 = vmul.f32 %v492_v46, %v4036_v59  ;;  %v499_v52 = vmul.f32 %v492_v46, %v4037_v48  ;;  %v500_v13 = vmul.f32 %v492_v46, %v4038_v61  ;;  %v501_v62 = vmul.f32 %v492_v46, %v4039_v45  ;;  %p2421_p0 = scmp.ne.s32.totalorder %s1790_s9, %s2420_s30  ;;  %p2426_p2 = scmp.lt.s32.totalorder %s2420_s30, %s2420_s30 }
 0x389   :  { %p2427_p3 = por %p2426_p2, %p2425_p1 }
 0x38a   :  { %v507_v14 = vpop.permute.xlu0 %506  ;;  %v512_v44 = vpop.permute.xlu1 %511 }
 0x38b   :  { %v514_v38 = vadd.f32 %v507_v14, %v494_v18  ;;  %v515_v7 = vadd.f32 %v507_v14, %v495_v27  ;;  %v516_v42 = vadd.f32 %v507_v14, %v496_v49  ;;  %v517_v50 = vadd.f32 %v507_v14, %v497_v57  ;;  %p2428_p4 = pnand %p2427_p3, %p2421_p0 }
 0x38c   :  { %v518_v63 = vadd.f32 %v512_v44, %v498_v60  ;;  %v519_v36 = vadd.f32 %v512_v44, %v499_v52  ;;  %v520_v1 = vadd.f32 %v512_v44, %v500_v13  ;;  %v521_v23 = vadd.f32 %v512_v44, %v501_v62 }
 0x38d   :  { %v522_v28 = vmax.f32 %v514_v38, 0.0  ;;  %v523_v12 = vmax.f32 %v515_v7, 0.0  ;;  %v524_v31 = vmax.f32 %v516_v42, 0.0  ;;  %v525_v22 = vmax.f32 %v517_v50, 0.0 }
 0x38e   :  { %v526_v16 = vmax.f32 %v518_v63, 0.0  ;;  %v527_v8 = vmax.f32 %v519_v36, 0.0  ;;  %v528_v32 = vmax.f32 %v520_v1, 0.0  ;;  %v529_v35 = vmax.f32 %v521_v23, 0.0  ;;  %v1757_v25 = vpop.permute.xlu0 %1756  ;;  %v222_v55 = vpop.permute.xlu1 %221 }
 0x38f   :  { %1767 = vst [vmem:[#allocation2] sm:$0xff] %v522_v28  ;;  %1768 = vst [vmem:[#allocation2 + $0x8] sm:$0xff] %v523_v12 }
 0x390   :  { %1776 = vst [vmem:[#allocation2 + $0x40] sm:$0xff] %v524_v31  ;;  %1777 = vst [vmem:[#allocation2 + $0x48] sm:$0xff] %v525_v22 }
 0x391   :  { %1771 = vst [vmem:[#allocation2 + $0x20] sm:$0xff] %v526_v16  ;;  %1772 = vst [vmem:[#allocation2 + $0x28] sm:$0xff] %v527_v8 }
 0x392   :  { %1780 = vst [vmem:[#allocation2 + $0x60] sm:$0xff] %v528_v32  ;;  %1781 = vst [vmem:[#allocation2 + $0x68] sm:$0xff] %v529_v35  ;;  %v224_v24 = vpop.permute.xlu0 %223  ;;  %v226_v2 = vpop.permute.xlu1 %225 }
 0x393   :  { %v228_v4 = vsel %vm4041_vm9, %v222_v55, %v224_v24  ;;  %v229_v58 = vsel %vm4045_vm1, %v224_v24, %v226_v2 }
 0x394   :  { %v232_v5 = vmax.f32 %v196_v20, %v228_v4  ;;  %v233_v11 = vmax.f32 %v2986_v40, %v229_v58 }
 0x396   :  { %v234_v37 = vmax.f32 %v232_v5, %v215_v29 }
 0x398   :  { %1773 = vst [vmem:[#allocation2 + $0x30] sm:$0xff] %v234_v37 }
 0x3ec   :  { %v334_v26 = vpop.permute.xlu0 %333 }
 0x3f0   :  { %v338_v6 = vpop.permute.xlu0 %337  ;;  %v336_v15 = vpop.permute.xlu1 %335 }
 0x3f1   :  { %v339_v39 = vsel %vm4047_vm13, %v334_v26, %v336_v15  ;;  %v340_v10 = vsel %vm4049_vm5, %v336_v15, %v338_v6 }
 0x3f2   :  { %v343_v9 = vmax.f32 %v313_v17, %v339_v39  ;;  %v344_v40 = vmax.f32 %v3808_v56, %v340_v10 }
 0x3f4   :  { %v324_v21 = vpop.permute.xlu0 %323  ;;  %v213_v33 = vpop.permute.xlu1 %212 }
 0x3f5   :  { %v216_v47 = vsel %vm4048_vm10, %v4042_v3, %v213_v33 }
 0x3f6   :  { %v220_v19 = vsel %vm86_vm14, %v216_v47, -inf }
 0x3f7   :  { %v235_v46 = vmax.f32 %v233_v11, %v220_v19 }
 0x3f8   :  { %v322_v18 = vpop.permute.xlu0 %321  ;;  %v326_v43 = vpop.permute.xlu1 %325 }
 0x3f9   :  { %1774 = vst [vmem:[#allocation2 + $0x38] sm:$0xff] %v235_v46  ;;  %v327_v27 = vsel %vm4050_vm8, %v322_v18, %v324_v21  ;;  %v328_v54 = vsel %vm4051_vm11, %v324_v21, %v326_v43 }
 0x3fa   :  { %v345_v49 = vmax.f32 %v343_v9, %v327_v27  ;;  %v332_v0 = vsel %vm86_vm14, %v328_v54, -inf }
 0x3fb   :  { %v346_v57 = vmax.f32 %v344_v40, %v332_v0 }
 0x3fc   :  { %1782 = vst [vmem:[#allocation2 + $0x70] sm:$0xff] %v345_v49 }
 0x3fd   :  { %1783 = vst [vmem:[#allocation2 + $0x78] sm:$0xff] %v346_v57 }
 0x42c   :  { %v1695_v59 = vpop.f32.mrf.mxu1  ;;  %v1736_v51 = vpop.f32.mrf.mxu0 }
 0x42d   :  { %v1749_v60 = vmul.f32 %v3820_v53, %v1695_v59  ;;  %v1751_v48 = vmul.f32 %v3820_v53, %v1736_v51 }
 0x42e   :  { %v1697_v52 = vpop.f32.mrf.mxu1  ;;  %v1738_v56 = vpop.f32.mrf.mxu0 }
 0x42f   :  { %v1759_v61 = vadd.f32 %v1757_v25, %v1749_v60  ;;  %v1761_v13 = vadd.f32 %v1757_v25, %v1751_v48  ;;  %v1750_v45 = vmul.f32 %v3820_v53, %v1697_v52  ;;  %v1752_v62 = vmul.f32 %v3820_v53, %v1738_v56 }
 0x430   :  { %v1699_v14 = vpop.f32.mrf.mxu1  ;;  %v1740_v44 = vpop.f32.mrf.mxu0 }
 0x431   :  { %v1763_v38 = vmax.f32 %v1759_v61, 0.0  ;;  %v1765_v7 = vmax.f32 %v1761_v13, 0.0  ;;  %v1760_v42 = vadd.f32 %v1757_v25, %v1750_v45  ;;  %v1762_v50 = vadd.f32 %v1757_v25, %v1752_v62 }
 0x432   :  { %v1700_v63 = vpop.f32.mrf.mxu1  ;;  %v1741_v36 = vpop.f32.mrf.mxu0 }
 0x433   :  { %1769 = vst [vmem:[#allocation2 + $0x10] sm:$0xff] %v1763_v38  ;;  %1778 = vst [vmem:[#allocation2 + $0x50] sm:$0xff] %v1765_v7  ;;  %v1764_v1 = vmax.f32 %v1760_v42, 0.0  ;;  %v1766_v23 = vmax.f32 %v1762_v50, 0.0 }
 0x435   :  { %1770 = vst [vmem:[#allocation2 + $0x18] sm:$0xff] %v1764_v1  ;;  %1779 = vst [vmem:[#allocation2 + $0x58] sm:$0xff] %v1766_v23 }
 0x436   :  { %2431 = shalt.err (!%p2428_p4)
}
 0x437   :  { %s2479_s13 = smov 256   ;;  %s2480_s19 = smov 16  }
 0x438   :  { %1795 = dma.vmem_to_hbm [thread:$0]  %s1790_s9, 2048, %s3872_s10, [#allocation3], %s2479_s13, %s2479_s13, %s2480_s19  }
 0x439   :  { %2440 = dma.done.wait [#allocation3], 2048  }
 0x43a   :  { %2441 = vsyncadd [#allocation3], 4294965248 }
 0x43b   :  { %1799 = vsyncpa [#allocation3], 1 }

</bundles_post_ra>
